<compile_context>
chip_gen: v5e
topology: v5e:2x2
jax: 0.10.0
libtpu: 0.0.40
codegen_flags: <defaults>
</compile_context>

<pallas_src>
import functools

import jax
import jax.numpy as jnp
from jax import lax
from jax.experimental import pallas as pl
from jax.experimental.pallas import tpu as pltpu


# ----------------------------------------------------------------------------
# BlockSpec helpers (grid = (batch, mel_tile))
# ----------------------------------------------------------------------------
def _const_spec(shape):
    """Whole-array block, same block for every grid step (weights/tables)."""
    zeros = (0,) * len(shape)
    return pl.BlockSpec(shape, lambda b, j: zeros)


def _batch_spec(shape):
    """Per-batch block: leading index follows the batch grid axis."""
    zeros = (0,) * (len(shape) - 1)
    return pl.BlockSpec(shape, lambda b, j: (b,) + zeros)


_VMEM_LIMIT = 32 * 1024 * 1024  # conservative: fits v7x's 64 MiB VMEM budget
_COMPILER_PARAMS = pltpu.CompilerParams(
    dimension_semantics=("parallel", "arbitrary"),  # batch parallel, mel tiles serial
    vmem_limit_bytes=_VMEM_LIMIT,
)


# ----------------------------------------------------------------------------
# Fused kernel: duration / pitch / energy VariancePredictors
#               + bucketize -> embedding -> add  (pitch, then energy)
#               + LengthRegulator (alignment @ x) emitting mel tiles
#   VariancePredictor: Conv1d(k, pad=(k-1)//2) -> ReLU -> LayerNorm
#                      -> Conv1d -> ReLU -> LayerNorm -> Linear(F,1)
#                      -> masked_fill(mask, 0)          (dropout = eval mode)
# ----------------------------------------------------------------------------
def _variance_adaptor_kernel(*refs, K, tile_ml):
    (x_ref, mask_ref, pt_ref, et_ref, starts_ref, ends_ref) = refs[:6]
    d_params = refs[6:16]
    p_params = refs[16:26]
    e_params = refs[26:36]
    pbins_ref, ptab_ref, ebins_ref, etab_ref = refs[36:40]
    logd_ref, pp_ref, ep_ref, mel_ref = refs[40:44]
    x_scr = refs[44]                           # (T, H) bf16 VMEM scratch

    j = pl.program_id(1)                       # mel-tile index (inner axis)
    pad = (K - 1) // 2
    mask_row = mask_ref[0]                     # (1, T) int32, 1 = padded

    def shift_rows(a, d):
        # s[t] = a[t + d] inside [0, T), zero outside == Conv1d zero padding.
        if d == 0:
            return a
        z = jnp.zeros((abs(d), a.shape[1]), a.dtype)
        if d > 0:
            return jnp.concatenate([a[d:], z], axis=0)
        return jnp.concatenate([z, a[:d]], axis=0)

    def conv1d(a, w_ref, b_ref):
        # PyTorch: out[t,f] = bias[f] + sum_{k,c} a[t+k-pad, c] * W[f,c,k]
        # Weights arrive pre-cast to bf16; activations cast ONCE per conv.
        a16 = a.astype(jnp.bfloat16)
        cout = w_ref.shape[2]
        acc = jnp.zeros((a.shape[0], cout), jnp.float32)
        for k in range(K):
            acc = acc + jnp.dot(shift_rows(a16, k - pad), w_ref[k],
                                preferred_element_type=jnp.float32)
        return acc + b_ref[...]

    def layer_norm(a, g_ref, be_ref):          # f32 statistics
        mu = jnp.mean(a, axis=-1, keepdims=True)
        var = jnp.mean(jnp.square(a - mu), axis=-1, keepdims=True)
        return (a - mu) * lax.rsqrt(var + 1e-5) * g_ref[...] + be_ref[...]

    def predictor(a, params):
        w1, b1, g1, be1, w2, b2, g2, be2, wl, bl = params
        h = conv1d(a, w1, b1)
        h = jnp.maximum(h, 0.0)
        h = layer_norm(h, g1, be1)
        h = conv1d(h, w2, b2)
        h = jnp.maximum(h, 0.0)
        h = layer_norm(h, g2, be2)
        # Linear(F, 1): contract F of (1,F) x (T,F) -> lane-dense (1, T)
        out = lax.dot_general(wl[...], h.astype(jnp.bfloat16),
                              (((1,), (1,)), ((), ())),
                              preferred_element_type=jnp.float32) + bl[...]
        return jnp.where(mask_row > 0, 0.0, out)

    def bucket_embed(tgt, bins_ref, tab_ref):
        # torch.bucketize(right=False): idx = #{bins < v}; exact one-hot matmul
        nb = tab_ref.shape[0]
        idx = jnp.sum((tgt > bins_ref[...]).astype(jnp.int32),
                      axis=-1, keepdims=True)                       # (T, 1)
        lanes = lax.broadcasted_iota(jnp.int32, (tgt.shape[0], nb), 1)
        onehot = (lanes == idx).astype(jnp.bfloat16)                # (T, nb)
        return jnp.dot(onehot, tab_ref[...],
                       preferred_element_type=jnp.float32)          # (T, H) f32

    # Heavy per-batch work only on the first mel tile of each batch; the final
    # activations live in VMEM scratch for the remaining mel tiles.
    @pl.when(j == 0)
    def _():
        x = x_ref[0].astype(jnp.float32)                            # (T, H)
        logd_ref[0] = predictor(x, d_params)
        pp_ref[0] = predictor(x, p_params)
        x = x + bucket_embed(pt_ref[0], pbins_ref, ptab_ref)        # pitch add
        ep_ref[0] = predictor(x, e_params)                          # uses x+pitch
        x = x + bucket_embed(et_ref[0], ebins_ref, etab_ref)        # energy add
        x_scr[...] = x.astype(x_scr.dtype)

    # Length regulator for this mel tile: alignment[f, t] = 1 iff frame f in
    # [start_t, end_t).  Exact one-hot rows -> mel carries only bf16 rounding
    # of x itself.
    starts = starts_ref[0]                                          # (1, T) int32
    ends = ends_ref[0]                                              # (1, T) int32
    frames = (lax.broadcasted_iota(jnp.int32, (tile_ml, starts.shape[1]), 0)
              + j * tile_ml)
    align = ((frames >= starts) & (frames < ends)).astype(jnp.bfloat16)
    mel_ref[0] = jnp.dot(align, x_scr[...],
                         preferred_element_type=jnp.float32).astype(mel_ref.dtype)


# ----------------------------------------------------------------------------
# VarianceAdaptor forward (teacher-forced branch, phoneme-level pitch/energy)
# ----------------------------------------------------------------------------
def variance_adaptor_forward(params, x, src_mask, pitch_target, energy_target,
                             duration_target, max_len, *, tile_ml=None):
    B, T, H = x.shape
    K, _, F = params["duration"]["w1"].shape
    NB = params["pitch_embedding"].shape[0]

    if tile_ml is None:
        tile_ml = max_len if max_len <= 128 else 128
    n_tiles = -(-max_len // tile_ml)
    ml_pad = n_tiles * tile_ml
    if n_tiles > 1:
        assert tile_ml % 8 == 0, "mel tile must be a multiple of 8 sublanes"

    # Accept/emit activations in bf16 (halves the x / mel HBM traffic).
    x_bf = x.astype(jnp.bfloat16)
    mask3 = src_mask.reshape(B, 1, T).astype(jnp.int32)
    pt3 = pitch_target.reshape(B, T, 1).astype(jnp.float32)
    et3 = energy_target.reshape(B, T, 1).astype(jnp.float32)

    # Length-regulator bookkeeping in the wrapper (no O(N^2) scaffolding).
    dur = duration_target.astype(jnp.int32)
    ends = jnp.cumsum(dur, axis=-1)                                 # (B, T)
    starts = ends - dur
    starts3 = starts.reshape(B, 1, T)
    ends3 = ends.reshape(B, 1, T)

    # Pre-cast matmul weights / tables to bf16 (LN params, biases, bins f32).
    def cast_vp(p):
        q = dict(p)
        for n in ("w1", "w2", "wl"):
            q[n] = p[n].astype(jnp.bfloat16)
        return q

    order = ("w1", "b1", "g1", "be1", "w2", "b2", "g2", "be2", "wl", "bl")
    dur_p = cast_vp(params["duration"])
    pit_p = cast_vp(params["pitch"])
    ene_p = cast_vp(params["energy"])
    d_p = tuple(dur_p[n] for n in order)
    p_p = tuple(pit_p[n] for n in order)
    e_p = tuple(ene_p[n] for n in order)
    ptab = params["pitch_embedding"].astype(jnp.bfloat16)
    etab = params["energy_embedding"].astype(jnp.bfloat16)

    vp_specs = [_const_spec((K, H, F)), _const_spec((1, F)), _const_spec((1, F)),
                _const_spec((1, F)), _const_spec((K, F, F)), _const_spec((1, F)),
                _const_spec((1, F)), _const_spec((1, F)), _const_spec((1, F)),
                _const_spec((1, 1))]

    in_specs = ([_batch_spec((1, T, H)),      # x (bf16)
                 _batch_spec((1, 1, T)),      # mask (lane-dense)
                 _batch_spec((1, T, 1)),      # pitch target
                 _batch_spec((1, T, 1)),      # energy target
                 _batch_spec((1, 1, T)),      # frame starts (int32)
                 _batch_spec((1, 1, T))]      # frame ends (int32)
                + vp_specs * 3
                + [_const_spec((1, NB - 1)), _const_spec((NB, H)),
                   _const_spec((1, NB - 1)), _const_spec((NB, H))])

    out_shape = (jax.ShapeDtypeStruct((B, 1, T), jnp.float32),
                 jax.ShapeDtypeStruct((B, 1, T), jnp.float32),
                 jax.ShapeDtypeStruct((B, 1, T), jnp.float32),
                 jax.ShapeDtypeStruct((B, ml_pad, H), jnp.bfloat16))
    out_specs = (_batch_spec((1, 1, T)), _batch_spec((1, 1, T)),
                 _batch_spec((1, 1, T)),
                 pl.BlockSpec((1, tile_ml, H), lambda b, j: (b, j, 0)))

    kernel = functools.partial(_variance_adaptor_kernel, K=K, tile_ml=tile_ml)
    logd3, pp3, ep3, mel_pad = pl.pallas_call(
        kernel,
        grid=(B, n_tiles),
        out_shape=out_shape,
        in_specs=in_specs,
        out_specs=out_specs,
        scratch_shapes=[pltpu.VMEM((T, H), jnp.bfloat16)],
        compiler_params=_COMPILER_PARAMS,
    )(x_bf, mask3, pt3, et3, starts3, ends3, *d_p, *p_p, *e_p,
      params["pitch_bins"], ptab, params["energy_bins"], etab)

    mel = mel_pad[:, :max_len]
    mel_len = jnp.sum(dur, axis=-1)
    duration_rounded = duration_target
    mel_mask = None  # duration_target given -> PyTorch returns mel_mask as passed
    return (mel, pp3.reshape(B, T), ep3.reshape(B, T), logd3.reshape(B, T),
            duration_rounded, mel_len, mel_mask)


# ----------------------------------------------------------------------------
# deterministic parameter init (shapes from the PyTorch __init__)
# ----------------------------------------------------------------------------
def init_params(key, H, F, K, n_bins):
    def vp(k0):
        k = jax.random.split(k0, 10)
        return {
            "w1": 0.1 * jax.random.normal(k[0], (K, H, F), jnp.float32),   # Conv1d(H->F,k)
            "b1": 0.1 * jax.random.normal(k[1], (1, F), jnp.float32),
            "g1": 1.0 + 0.1 * jax.random.normal(k[2], (1, F), jnp.float32),
            "be1": 0.1 * jax.random.normal(k[3], (1, F), jnp.float32),
            "w2": 0.1 * jax.random.normal(k[4], (K, F, F), jnp.float32),   # Conv1d(F->F,k)
            "b2": 0.1 * jax.random.normal(k[5], (1, F), jnp.float32),
            "g2": 1.0 + 0.1 * jax.random.normal(k[6], (1, F), jnp.float32),
            "be2": 0.1 * jax.random.normal(k[7], (1, F), jnp.float32),
            "wl": 0.1 * jax.random.normal(k[8], (1, F), jnp.float32),      # Linear(F,1)
            "bl": 0.1 * jax.random.normal(k[9], (1, 1), jnp.float32),
        }

    ks = jax.random.split(key, 5)
    return {
        "duration": vp(ks[0]),
        "pitch": vp(ks[1]),
        "energy": vp(ks[2]),
        # linear quantization bins (stats: pitch in [-2,2], energy in [0,5])
        "pitch_bins": jnp.linspace(-2.0, 2.0, n_bins - 1,
                                   dtype=jnp.float32).reshape(1, n_bins - 1),
        "energy_bins": jnp.linspace(0.0, 5.0, n_bins - 1,
                                    dtype=jnp.float32).reshape(1, n_bins - 1),
        "pitch_embedding": 0.1 * jax.random.normal(ks[3], (n_bins, H), jnp.float32),
        "energy_embedding": 0.1 * jax.random.normal(ks[4], (n_bins, H), jnp.float32),
    }


# ----------------------------------------------------------------------------
# pure-JAX reference (independent formulation, all-f32) for correctness
# ----------------------------------------------------------------------------
def _ref_variance_predictor(x, mask, p):
    def conv(a, w, b):
        K = w.shape[0]
        pad = (K - 1) // 2
        y = lax.conv_general_dilated(a, w, window_strides=(1,),
                                     padding=[(pad, pad)],
                                     dimension_numbers=("NHC", "HIO", "NHC"))
        return y + b.reshape(1, 1, -1)

    def ln(a, g, be):
        mu = a.mean(-1, keepdims=True)
        var = ((a - mu) ** 2).mean(-1, keepdims=True)
        return (a - mu) / jnp.sqrt(var + 1e-5) * g.reshape(1, 1, -1) + be.reshape(1, 1, -1)

    h = conv(x, p["w1"], p["b1"]); h = jnp.maximum(h, 0.0); h = ln(h, p["g1"], p["be1"])
    h = conv(h, p["w2"], p["b2"]); h = jnp.maximum(h, 0.0); h = ln(h, p["g2"], p["be2"])
    out = (h * p["wl"].reshape(1, 1, -1)).sum(-1) + p["bl"][0, 0]
    return jnp.where(mask, 0.0, out)


def _ref_bucket_embed_add(x, target, bins, table):
    idx = jnp.sum(target[..., None] > bins.reshape(-1), axis=-1)
    return x + table[idx]


def _ref_length_regulator(x, duration, max_len):
    ends = jnp.cumsum(duration, axis=-1).astype(jnp.float32)
    starts = ends - duration.astype(jnp.float32)
    frames = jnp.arange(max_len, dtype=jnp.float32)[None, :, None]
    align = ((frames >= starts[:, None, :]) & (frames < ends[:, None, :])).astype(jnp.float32)
    return jnp.einsum("bfj,bjh->bfh", align, x), duration.sum(-1)


def _ref_forward(params, x, src_mask, pitch_t, energy_t, duration_t, max_len):
    log_d = _ref_variance_predictor(x, src_mask, params["duration"])
    pitch_pred = _ref_variance_predictor(x, src_mask, params["pitch"])
    x = _ref_bucket_embed_add(x, pitch_t, params["pitch_bins"], params["pitch_embedding"])
    energy_pred = _ref_variance_predictor(x, src_mask, params["energy"])
    x = _ref_bucket_embed_add(x, energy_t, params["energy_bins"], params["energy_embedding"])
    out, mel_len = _ref_length_regulator(x, duration_t, max_len)
    return out, pitch_pred, energy_pred, log_d, mel_len


# ----------------------------------------------------------------------------
if __name__ == "__main__":
    B, T, H, F, K, NB, MAX_LEN = 2, 8, 32, 32, 3, 16, 24

    key = jax.random.PRNGKey(0)
    kp, kx, kpt, ket, kdt = jax.random.split(key, 5)
    params = init_params(kp, H, F, K, NB)

    x = jax.random.normal(kx, (B, T, H), jnp.float32)
    src_lens = jnp.array([T, T - 2], jnp.int32)
    src_mask = jnp.arange(T)[None, :] >= src_lens[:, None]        # True = padded
    pitch_target = jax.random.normal(kpt, (B, T), jnp.float32)
    energy_target = 2.5 + jax.random.normal(ket, (B, T), jnp.float32)
    duration_target = jax.random.randint(kdt, (B, T), 0, 4).astype(jnp.int32)
    # real FastSpeech2 duration targets are zero at padded phoneme positions
    duration_target = jnp.where(src_mask, 0, duration_target)
    assert int(jnp.max(jnp.sum(duration_target, -1))) <= MAX_LEN

    # tile_ml=8 -> 3 mel tiles per batch, exercising the fused mel-tile axis.
    outs = variance_adaptor_forward(params, x, src_mask, pitch_target,
                                    energy_target, duration_target, MAX_LEN,
                                    tile_ml=8)
    outs = jax.block_until_ready(outs)
    mel, pitch_pred, energy_pred, log_d, dur_rounded, mel_len, mel_mask = outs

    # Reference gets the same bf16-rounded inputs/weights the kernel uses, so
    # the remaining difference is only bf16 MXU operand rounding (f32 accum).
    def bf16_round(a):
        return a.astype(jnp.bfloat16).astype(jnp.float32)

    def round_vp(p):
        q = dict(p)
        for n in ("w1", "w2", "wl"):
            q[n] = bf16_round(p[n])
        return q

    ref_params = dict(params)
    ref_params["duration"] = round_vp(params["duration"])
    ref_params["pitch"] = round_vp(params["pitch"])
    ref_params["energy"] = round_vp(params["energy"])
    ref_params["pitch_embedding"] = bf16_round(params["pitch_embedding"])
    ref_params["energy_embedding"] = bf16_round(params["energy_embedding"])
    x_ref_in = bf16_round(x)

    ref_mel, ref_pp, ref_ep, ref_ld, ref_ml = _ref_forward(
        ref_params, x_ref_in, src_mask, pitch_target, energy_target,
        duration_target, MAX_LEN)

    assert jnp.allclose(log_d, ref_ld, rtol=2e-2, atol=2e-2)
    assert jnp.allclose(pitch_pred, ref_pp, rtol=2e-2, atol=2e-2)
    assert jnp.allclose(energy_pred, ref_ep, rtol=2e-2, atol=2e-2)
    assert jnp.allclose(mel.astype(jnp.float32), ref_mel, rtol=2e-2, atol=2e-2)
    assert jnp.array_equal(mel_len, ref_ml)
    assert mel.shape == (B, MAX_LEN, H)

    print("KERNEL_OK")
</pallas_src>

<mosaic_0001>
module attributes {stable_mosaic.version = 11 : i64} {
  func.func @_variance_adaptor_kernel(%arg0: i32, %arg1: i32, %arg2: memref<1x8x32xbf16, #tpu.memory_space<vmem>>, %arg3: memref<1x1x8xi32, #tpu.memory_space<vmem>>, %arg4: memref<1x8x1xf32, #tpu.memory_space<vmem>>, %arg5: memref<1x8x1xf32, #tpu.memory_space<vmem>>, %arg6: memref<1x1x8xi32, #tpu.memory_space<vmem>>, %arg7: memref<1x1x8xi32, #tpu.memory_space<vmem>>, %arg8: memref<3x32x32xbf16, #tpu.memory_space<vmem>>, %arg9: memref<1x32xf32, #tpu.memory_space<vmem>>, %arg10: memref<1x32xf32, #tpu.memory_space<vmem>>, %arg11: memref<1x32xf32, #tpu.memory_space<vmem>>, %arg12: memref<3x32x32xbf16, #tpu.memory_space<vmem>>, %arg13: memref<1x32xf32, #tpu.memory_space<vmem>>, %arg14: memref<1x32xf32, #tpu.memory_space<vmem>>, %arg15: memref<1x32xf32, #tpu.memory_space<vmem>>, %arg16: memref<1x32xbf16, #tpu.memory_space<vmem>>, %arg17: memref<1x1xf32, #tpu.memory_space<vmem>>, %arg18: memref<3x32x32xbf16, #tpu.memory_space<vmem>>, %arg19: memref<1x32xf32, #tpu.memory_space<vmem>>, %arg20: memref<1x32xf32, #tpu.memory_space<vmem>>, %arg21: memref<1x32xf32, #tpu.memory_space<vmem>>, %arg22: memref<3x32x32xbf16, #tpu.memory_space<vmem>>, %arg23: memref<1x32xf32, #tpu.memory_space<vmem>>, %arg24: memref<1x32xf32, #tpu.memory_space<vmem>>, %arg25: memref<1x32xf32, #tpu.memory_space<vmem>>, %arg26: memref<1x32xbf16, #tpu.memory_space<vmem>>, %arg27: memref<1x1xf32, #tpu.memory_space<vmem>>, %arg28: memref<3x32x32xbf16, #tpu.memory_space<vmem>>, %arg29: memref<1x32xf32, #tpu.memory_space<vmem>>, %arg30: memref<1x32xf32, #tpu.memory_space<vmem>>, %arg31: memref<1x32xf32, #tpu.memory_space<vmem>>, %arg32: memref<3x32x32xbf16, #tpu.memory_space<vmem>>, %arg33: memref<1x32xf32, #tpu.memory_space<vmem>>, %arg34: memref<1x32xf32, #tpu.memory_space<vmem>>, %arg35: memref<1x32xf32, #tpu.memory_space<vmem>>, %arg36: memref<1x32xbf16, #tpu.memory_space<vmem>>, %arg37: memref<1x1xf32, #tpu.memory_space<vmem>>, %arg38: memref<1x15xf32, #tpu.memory_space<vmem>>, %arg39: memref<16x32xbf16, #tpu.memory_space<vmem>>, %arg40: memref<1x15xf32, #tpu.memory_space<vmem>>, %arg41: memref<16x32xbf16, #tpu.memory_space<vmem>>, %arg42: memref<1x1x8xf32, #tpu.memory_space<vmem>>, %arg43: memref<1x1x8xf32, #tpu.memory_space<vmem>>, %arg44: memref<1x1x8xf32, #tpu.memory_space<vmem>>, %arg45: memref<1x8x32xbf16, #tpu.memory_space<vmem>>, %arg46: memref<8x32xbf16, #tpu.memory_space<vmem>>) attributes {dimension_semantics = [#tpu.dimension_semantics<parallel>, #tpu.dimension_semantics<arbitrary>], iteration_bounds = array<i64: 2, 3>, scalar_prefetch = 0 : i64, scratch_operands = 1 : i64, tpu.core_type = #tpu.core_type<tc>, window_params = [{transform_indices = @transform_0, window_bounds = array<i64: 1, 8, 32>}, {transform_indices = @transform_1, window_bounds = array<i64: 1, 1, 8>}, {transform_indices = @transform_2, window_bounds = array<i64: 1, 8, 1>}, {transform_indices = @transform_3, window_bounds = array<i64: 1, 8, 1>}, {transform_indices = @transform_4, window_bounds = array<i64: 1, 1, 8>}, {transform_indices = @transform_5, window_bounds = array<i64: 1, 1, 8>}, {pipeline_mode = #tpu.pipeline_mode<synchronous>, transform_indices = @transform_6, window_bounds = array<i64: 3, 32, 32>}, {pipeline_mode = #tpu.pipeline_mode<synchronous>, transform_indices = @transform_7, window_bounds = array<i64: 1, 32>}, {pipeline_mode = #tpu.pipeline_mode<synchronous>, transform_indices = @transform_8, window_bounds = array<i64: 1, 32>}, {pipeline_mode = #tpu.pipeline_mode<synchronous>, transform_indices = @transform_9, window_bounds = array<i64: 1, 32>}, {pipeline_mode = #tpu.pipeline_mode<synchronous>, transform_indices = @transform_10, window_bounds = array<i64: 3, 32, 32>}, {pipeline_mode = #tpu.pipeline_mode<synchronous>, transform_indices = @transform_11, window_bounds = array<i64: 1, 32>}, {pipeline_mode = #tpu.pipeline_mode<synchronous>, transform_indices = @transform_12, window_bounds = array<i64: 1, 32>}, {pipeline_mode = #tpu.pipeline_mode<synchronous>, transform_indices = @transform_13, window_bounds = array<i64: 1, 32>}, {pipeline_mode = #tpu.pipeline_mode<synchronous>, transform_indices = @transform_14, window_bounds = array<i64: 1, 32>}, {pipeline_mode = #tpu.pipeline_mode<synchronous>, transform_indices = @transform_15, window_bounds = array<i64: 1, 1>}, {pipeline_mode = #tpu.pipeline_mode<synchronous>, transform_indices = @transform_16, window_bounds = array<i64: 3, 32, 32>}, {pipeline_mode = #tpu.pipeline_mode<synchronous>, transform_indices = @transform_17, window_bounds = array<i64: 1, 32>}, {pipeline_mode = #tpu.pipeline_mode<synchronous>, transform_indices = @transform_18, window_bounds = array<i64: 1, 32>}, {pipeline_mode = #tpu.pipeline_mode<synchronous>, transform_indices = @transform_19, window_bounds = array<i64: 1, 32>}, {pipeline_mode = #tpu.pipeline_mode<synchronous>, transform_indices = @transform_20, window_bounds = array<i64: 3, 32, 32>}, {pipeline_mode = #tpu.pipeline_mode<synchronous>, transform_indices = @transform_21, window_bounds = array<i64: 1, 32>}, {pipeline_mode = #tpu.pipeline_mode<synchronous>, transform_indices = @transform_22, window_bounds = array<i64: 1, 32>}, {pipeline_mode = #tpu.pipeline_mode<synchronous>, transform_indices = @transform_23, window_bounds = array<i64: 1, 32>}, {pipeline_mode = #tpu.pipeline_mode<synchronous>, transform_indices = @transform_24, window_bounds = array<i64: 1, 32>}, {pipeline_mode = #tpu.pipeline_mode<synchronous>, transform_indices = @transform_25, window_bounds = array<i64: 1, 1>}, {pipeline_mode = #tpu.pipeline_mode<synchronous>, transform_indices = @transform_26, window_bounds = array<i64: 3, 32, 32>}, {pipeline_mode = #tpu.pipeline_mode<synchronous>, transform_indices = @transform_27, window_bounds = array<i64: 1, 32>}, {pipeline_mode = #tpu.pipeline_mode<synchronous>, transform_indices = @transform_28, window_bounds = array<i64: 1, 32>}, {pipeline_mode = #tpu.pipeline_mode<synchronous>, transform_indices = @transform_29, window_bounds = array<i64: 1, 32>}, {pipeline_mode = #tpu.pipeline_mode<synchronous>, transform_indices = @transform_30, window_bounds = array<i64: 3, 32, 32>}, {pipeline_mode = #tpu.pipeline_mode<synchronous>, transform_indices = @transform_31, window_bounds = array<i64: 1, 32>}, {pipeline_mode = #tpu.pipeline_mode<synchronous>, transform_indices = @transform_32, window_bounds = array<i64: 1, 32>}, {pipeline_mode = #tpu.pipeline_mode<synchronous>, transform_indices = @transform_33, window_bounds = array<i64: 1, 32>}, {pipeline_mode = #tpu.pipeline_mode<synchronous>, transform_indices = @transform_34, window_bounds = array<i64: 1, 32>}, {pipeline_mode = #tpu.pipeline_mode<synchronous>, transform_indices = @transform_35, window_bounds = array<i64: 1, 1>}, {pipeline_mode = #tpu.pipeline_mode<synchronous>, transform_indices = @transform_36, window_bounds = array<i64: 1, 15>}, {pipeline_mode = #tpu.pipeline_mode<synchronous>, transform_indices = @transform_37, window_bounds = array<i64: 16, 32>}, {pipeline_mode = #tpu.pipeline_mode<synchronous>, transform_indices = @transform_38, window_bounds = array<i64: 1, 15>}, {pipeline_mode = #tpu.pipeline_mode<synchronous>, transform_indices = @transform_39, window_bounds = array<i64: 16, 32>}, {transform_indices = @transform_40, window_bounds = array<i64: 1, 1, 8>}, {transform_indices = @transform_41, window_bounds = array<i64: 1, 1, 8>}, {transform_indices = @transform_42, window_bounds = array<i64: 1, 1, 8>}, {transform_indices = @transform_43, window_bounds = array<i64: 1, 8, 32>}]} {
    %c0 = arith.constant 0 : index
    %c0_0 = arith.constant 0 : index
    %c0_1 = arith.constant 0 : index
    %0 = vector.load %arg3[%c0, %c0_0, %c0_1] : memref<1x1x8xi32, #tpu.memory_space<vmem>>, vector<1x1x8xi32>
    %1 = vector.shape_cast %0 : vector<1x1x8xi32> to vector<1x8xi32>
    %c0_i32 = arith.constant 0 : i32
    %2 = arith.cmpi eq, %arg1, %c0_i32 : i32
    %3 = arith.extui %2 : i1 to i32
    %c0_i32_2 = arith.constant 0 : i32
    %4 = arith.cmpi ne, %3, %c0_i32_2 : i32
    scf.if %4 {
      %c0_14 = arith.constant 0 : index
      %c0_15 = arith.constant 0 : index
      %c0_16 = arith.constant 0 : index
      %27 = vector.load %arg2[%c0_14, %c0_15, %c0_16] : memref<1x8x32xbf16, #tpu.memory_space<vmem>>, vector<1x8x32xbf16>
      %28 = vector.shape_cast %27 : vector<1x8x32xbf16> to vector<8x32xbf16>
      %29 = arith.extf %28 : vector<8x32xbf16> to vector<8x32xf32>
      %30 = arith.truncf %29 : vector<8x32xf32> to vector<8x32xbf16>
      %cst_17 = arith.constant 0.000000e+00 : f32
      %31 = vector.broadcast %cst_17 : f32 to vector<8x32xf32>
      %cst_18 = arith.constant 0.000000e+00 : bf16
      %32 = vector.broadcast %cst_18 : bf16 to vector<1x32xbf16>
      %33 = vector.extract_strided_slice %30 {offsets = [0, 0], sizes = [7, 32], strides = [1, 1]} : vector<8x32xbf16> to vector<7x32xbf16>
      %34 = tpu.concatenate %32, %33 in 0 : vector<1x32xbf16>, vector<7x32xbf16> -> vector<8x32xbf16>
      %c0_19 = arith.constant 0 : index
      %c0_20 = arith.constant 0 : index
      %c0_21 = arith.constant 0 : index
      %35 = vector.load %arg8[%c0_19, %c0_20, %c0_21] : memref<3x32x32xbf16, #tpu.memory_space<vmem>>, vector<1x32x32xbf16>
      %36 = vector.shape_cast %35 : vector<1x32x32xbf16> to vector<32x32xbf16>
      %cst_22 = arith.constant dense<0.000000e+00> : vector<8x32xf32>
      %37 = tpu.matmul %34, %36, %cst_22 {dimension_numbers = #tpu.dot_dimension_numbers<[1], [0], [0], [1], [0, 0, 1, 1], [], []>} : vector<8x32xbf16>, vector<32x32xbf16>, vector<8x32xf32> -> vector<8x32xf32>
      %38 = arith.addf %31, %37 : vector<8x32xf32>
      %c1 = arith.constant 1 : index
      %c0_23 = arith.constant 0 : index
      %c0_24 = arith.constant 0 : index
      %39 = vector.load %arg8[%c1, %c0_23, %c0_24] : memref<3x32x32xbf16, #tpu.memory_space<vmem>>, vector<1x32x32xbf16>
      %40 = vector.shape_cast %39 : vector<1x32x32xbf16> to vector<32x32xbf16>
      %cst_25 = arith.constant dense<0.000000e+00> : vector<8x32xf32>
      %41 = tpu.matmul %30, %40, %cst_25 {dimension_numbers = #tpu.dot_dimension_numbers<[1], [0], [0], [1], [0, 0, 1, 1], [], []>} : vector<8x32xbf16>, vector<32x32xbf16>, vector<8x32xf32> -> vector<8x32xf32>
      %42 = arith.addf %38, %41 : vector<8x32xf32>
      %cst_26 = arith.constant 0.000000e+00 : bf16
      %43 = vector.broadcast %cst_26 : bf16 to vector<1x32xbf16>
      %44 = vector.extract_strided_slice %30 {offsets = [1, 0], sizes = [7, 32], strides = [1, 1]} : vector<8x32xbf16> to vector<7x32xbf16>
      %45 = tpu.concatenate %44, %43 in 0 : vector<7x32xbf16>, vector<1x32xbf16> -> vector<8x32xbf16>
      %c2 = arith.constant 2 : index
      %c0_27 = arith.constant 0 : index
      %c0_28 = arith.constant 0 : index
      %46 = vector.load %arg8[%c2, %c0_27, %c0_28] : memref<3x32x32xbf16, #tpu.memory_space<vmem>>, vector<1x32x32xbf16>
      %47 = vector.shape_cast %46 : vector<1x32x32xbf16> to vector<32x32xbf16>
      %cst_29 = arith.constant dense<0.000000e+00> : vector<8x32xf32>
      %48 = tpu.matmul %45, %47, %cst_29 {dimension_numbers = #tpu.dot_dimension_numbers<[1], [0], [0], [1], [0, 0, 1, 1], [], []>} : vector<8x32xbf16>, vector<32x32xbf16>, vector<8x32xf32> -> vector<8x32xf32>
      %49 = arith.addf %42, %48 : vector<8x32xf32>
      %c0_30 = arith.constant 0 : index
      %c0_31 = arith.constant 0 : index
      %50 = vector.load %arg9[%c0_30, %c0_31] : memref<1x32xf32, #tpu.memory_space<vmem>>, vector<1x32xf32>
      %51 = vector.broadcast %50 : vector<1x32xf32> to vector<8x32xf32>
      %52 = arith.addf %49, %51 : vector<8x32xf32>
      %cst_32 = arith.constant 0.000000e+00 : f32
      %53 = vector.broadcast %cst_32 : f32 to vector<8x32xf32>
      %54 = arith.maximumf %52, %53 : vector<8x32xf32>
      %cst_33 = arith.constant dense<0.000000e+00> : vector<8xf32>
      %55 = vector.multi_reduction <add>, %54, %cst_33 [1] : vector<8x32xf32> to vector<8xf32>
      %56 = vector.shape_cast %55 : vector<8xf32> to vector<8x1xf32>
      %cst_34 = arith.constant 3.200000e+01 : f32
      %57 = vector.broadcast %cst_34 : f32 to vector<8x1xf32>
      %58 = arith.divf %56, %57 : vector<8x1xf32>
      %59 = vector.broadcast %58 : vector<8x1xf32> to vector<8x32xf32>
      %60 = arith.subf %54, %59 : vector<8x32xf32>
      %61 = arith.mulf %60, %60 : vector<8x32xf32>
      %cst_35 = arith.constant dense<0.000000e+00> : vector<8xf32>
      %62 = vector.multi_reduction <add>, %61, %cst_35 [1] : vector<8x32xf32> to vector<8xf32>
      %63 = vector.shape_cast %62 : vector<8xf32> to vector<8x1xf32>
      %cst_36 = arith.constant 3.200000e+01 : f32
      %64 = vector.broadcast %cst_36 : f32 to vector<8x1xf32>
      %65 = arith.divf %63, %64 : vector<8x1xf32>
      %66 = vector.broadcast %58 : vector<8x1xf32> to vector<8x32xf32>
      %67 = arith.subf %54, %66 : vector<8x32xf32>
      %cst_37 = arith.constant 9.99999974E-6 : f32
      %68 = vector.broadcast %cst_37 : f32 to vector<8x1xf32>
      %69 = arith.addf %65, %68 : vector<8x1xf32>
      %70 = math.rsqrt %69 : vector<8x1xf32>
      %71 = vector.broadcast %70 : vector<8x1xf32> to vector<8x32xf32>
      %72 = arith.mulf %67, %71 : vector<8x32xf32>
      %c0_38 = arith.constant 0 : index
      %c0_39 = arith.constant 0 : index
      %73 = vector.load %arg10[%c0_38, %c0_39] : memref<1x32xf32, #tpu.memory_space<vmem>>, vector<1x32xf32>
      %74 = vector.broadcast %73 : vector<1x32xf32> to vector<8x32xf32>
      %75 = arith.mulf %72, %74 : vector<8x32xf32>
      %c0_40 = arith.constant 0 : index
      %c0_41 = arith.constant 0 : index
      %76 = vector.load %arg11[%c0_40, %c0_41] : memref<1x32xf32, #tpu.memory_space<vmem>>, vector<1x32xf32>
      %77 = vector.broadcast %76 : vector<1x32xf32> to vector<8x32xf32>
      %78 = arith.addf %75, %77 : vector<8x32xf32>
      %79 = arith.truncf %78 : vector<8x32xf32> to vector<8x32xbf16>
      %cst_42 = arith.constant 0.000000e+00 : f32
      %80 = vector.broadcast %cst_42 : f32 to vector<8x32xf32>
      %cst_43 = arith.constant 0.000000e+00 : bf16
      %81 = vector.broadcast %cst_43 : bf16 to vector<1x32xbf16>
      %82 = vector.extract_strided_slice %79 {offsets = [0, 0], sizes = [7, 32], strides = [1, 1]} : vector<8x32xbf16> to vector<7x32xbf16>
      %83 = tpu.concatenate %81, %82 in 0 : vector<1x32xbf16>, vector<7x32xbf16> -> vector<8x32xbf16>
      %c0_44 = arith.constant 0 : index
      %c0_45 = arith.constant 0 : index
      %c0_46 = arith.constant 0 : index
      %84 = vector.load %arg12[%c0_44, %c0_45, %c0_46] : memref<3x32x32xbf16, #tpu.memory_space<vmem>>, vector<1x32x32xbf16>
      %85 = vector.shape_cast %84 : vector<1x32x32xbf16> to vector<32x32xbf16>
      %cst_47 = arith.constant dense<0.000000e+00> : vector<8x32xf32>
      %86 = tpu.matmul %83, %85, %cst_47 {dimension_numbers = #tpu.dot_dimension_numbers<[1], [0], [0], [1], [0, 0, 1, 1], [], []>} : vector<8x32xbf16>, vector<32x32xbf16>, vector<8x32xf32> -> vector<8x32xf32>
      %87 = arith.addf %80, %86 : vector<8x32xf32>
      %c1_48 = arith.constant 1 : index
      %c0_49 = arith.constant 0 : index
      %c0_50 = arith.constant 0 : index
      %88 = vector.load %arg12[%c1_48, %c0_49, %c0_50] : memref<3x32x32xbf16, #tpu.memory_space<vmem>>, vector<1x32x32xbf16>
      %89 = vector.shape_cast %88 : vector<1x32x32xbf16> to vector<32x32xbf16>
      %cst_51 = arith.constant dense<0.000000e+00> : vector<8x32xf32>
      %90 = tpu.matmul %79, %89, %cst_51 {dimension_numbers = #tpu.dot_dimension_numbers<[1], [0], [0], [1], [0, 0, 1, 1], [], []>} : vector<8x32xbf16>, vector<32x32xbf16>, vector<8x32xf32> -> vector<8x32xf32>
      %91 = arith.addf %87, %90 : vector<8x32xf32>
      %cst_52 = arith.constant 0.000000e+00 : bf16
      %92 = vector.broadcast %cst_52 : bf16 to vector<1x32xbf16>
      %93 = vector.extract_strided_slice %79 {offsets = [1, 0], sizes = [7, 32], strides = [1, 1]} : vector<8x32xbf16> to vector<7x32xbf16>
      %94 = tpu.concatenate %93, %92 in 0 : vector<7x32xbf16>, vector<1x32xbf16> -> vector<8x32xbf16>
      %c2_53 = arith.constant 2 : index
      %c0_54 = arith.constant 0 : index
      %c0_55 = arith.constant 0 : index
      %95 = vector.load %arg12[%c2_53, %c0_54, %c0_55] : memref<3x32x32xbf16, #tpu.memory_space<vmem>>, vector<1x32x32xbf16>
      %96 = vector.shape_cast %95 : vector<1x32x32xbf16> to vector<32x32xbf16>
      %cst_56 = arith.constant dense<0.000000e+00> : vector<8x32xf32>
      %97 = tpu.matmul %94, %96, %cst_56 {dimension_numbers = #tpu.dot_dimension_numbers<[1], [0], [0], [1], [0, 0, 1, 1], [], []>} : vector<8x32xbf16>, vector<32x32xbf16>, vector<8x32xf32> -> vector<8x32xf32>
      %98 = arith.addf %91, %97 : vector<8x32xf32>
      %c0_57 = arith.constant 0 : index
      %c0_58 = arith.constant 0 : index
      %99 = vector.load %arg13[%c0_57, %c0_58] : memref<1x32xf32, #tpu.memory_space<vmem>>, vector<1x32xf32>
      %100 = vector.broadcast %99 : vector<1x32xf32> to vector<8x32xf32>
      %101 = arith.addf %98, %100 : vector<8x32xf32>
      %cst_59 = arith.constant 0.000000e+00 : f32
      %102 = vector.broadcast %cst_59 : f32 to vector<8x32xf32>
      %103 = arith.maximumf %101, %102 : vector<8x32xf32>
      %cst_60 = arith.constant dense<0.000000e+00> : vector<8xf32>
      %104 = vector.multi_reduction <add>, %103, %cst_60 [1] : vector<8x32xf32> to vector<8xf32>
      %105 = vector.shape_cast %104 : vector<8xf32> to vector<8x1xf32>
      %cst_61 = arith.constant 3.200000e+01 : f32
      %106 = vector.broadcast %cst_61 : f32 to vector<8x1xf32>
      %107 = arith.divf %105, %106 : vector<8x1xf32>
      %108 = vector.broadcast %107 : vector<8x1xf32> to vector<8x32xf32>
      %109 = arith.subf %103, %108 : vector<8x32xf32>
      %110 = arith.mulf %109, %109 : vector<8x32xf32>
      %cst_62 = arith.constant dense<0.000000e+00> : vector<8xf32>
      %111 = vector.multi_reduction <add>, %110, %cst_62 [1] : vector<8x32xf32> to vector<8xf32>
      %112 = vector.shape_cast %111 : vector<8xf32> to vector<8x1xf32>
      %cst_63 = arith.constant 3.200000e+01 : f32
      %113 = vector.broadcast %cst_63 : f32 to vector<8x1xf32>
      %114 = arith.divf %112, %113 : vector<8x1xf32>
      %115 = vector.broadcast %107 : vector<8x1xf32> to vector<8x32xf32>
      %116 = arith.subf %103, %115 : vector<8x32xf32>
      %cst_64 = arith.constant 9.99999974E-6 : f32
      %117 = vector.broadcast %cst_64 : f32 to vector<8x1xf32>
      %118 = arith.addf %114, %117 : vector<8x1xf32>
      %119 = math.rsqrt %118 : vector<8x1xf32>
      %120 = vector.broadcast %119 : vector<8x1xf32> to vector<8x32xf32>
      %121 = arith.mulf %116, %120 : vector<8x32xf32>
      %c0_65 = arith.constant 0 : index
      %c0_66 = arith.constant 0 : index
      %122 = vector.load %arg14[%c0_65, %c0_66] : memref<1x32xf32, #tpu.memory_space<vmem>>, vector<1x32xf32>
      %123 = vector.broadcast %122 : vector<1x32xf32> to vector<8x32xf32>
      %124 = arith.mulf %121, %123 : vector<8x32xf32>
      %c0_67 = arith.constant 0 : index
      %c0_68 = arith.constant 0 : index
      %125 = vector.load %arg15[%c0_67, %c0_68] : memref<1x32xf32, #tpu.memory_space<vmem>>, vector<1x32xf32>
      %126 = vector.broadcast %125 : vector<1x32xf32> to vector<8x32xf32>
      %127 = arith.addf %124, %126 : vector<8x32xf32>
      %c0_69 = arith.constant 0 : index
      %c0_70 = arith.constant 0 : index
      %128 = vector.load %arg16[%c0_69, %c0_70] : memref<1x32xbf16, #tpu.memory_space<vmem>>, vector<1x32xbf16>
      %129 = arith.truncf %127 : vector<8x32xf32> to vector<8x32xbf16>
      %cst_71 = arith.constant dense<0.000000e+00> : vector<1x8xf32>
      %130 = tpu.matmul %128, %129, %cst_71 {dimension_numbers = #tpu.dot_dimension_numbers<[1], [1], [0], [0], [0, 0, 1, 0], [], []>} : vector<1x32xbf16>, vector<8x32xbf16>, vector<1x8xf32> -> vector<1x8xf32>
      %c0_72 = arith.constant 0 : index
      %c0_73 = arith.constant 0 : index
      %131 = vector.load %arg17[%c0_72, %c0_73] : memref<1x1xf32, #tpu.memory_space<vmem>>, vector<1x1xf32>
      %132 = vector.broadcast %131 : vector<1x1xf32> to vector<1x8xf32>
      %133 = arith.addf %130, %132 : vector<1x8xf32>
      %c0_i32_74 = arith.constant 0 : i32
      %134 = vector.broadcast %c0_i32_74 : i32 to vector<1x8xi32>
      %135 = arith.cmpi sgt, %1, %134 : vector<1x8xi32>
      %cst_75 = arith.constant 0.000000e+00 : f32
      %136 = vector.broadcast %cst_75 : f32 to vector<1x8xf32>
      %137 = arith.select %135, %136, %133 : vector<1x8xi1>, vector<1x8xf32>
      %c0_76 = arith.constant 0 : index
      %c0_77 = arith.constant 0 : index
      %c0_78 = arith.constant 0 : index
      %138 = vector.load %arg42[%c0_76, %c0_77, %c0_78] : memref<1x1x8xf32, #tpu.memory_space<vmem>>, vector<1x1x8xf32>
      %139 = vector.shape_cast %138 : vector<1x1x8xf32> to vector<1x8xf32>
      %140 = vector.shape_cast %137 : vector<1x8xf32> to vector<1x1x8xf32>
      tpu.vector_store %arg42[%c0_76, %c0_77, %c0_78], %140 {strides = array<i32>} : memref<1x1x8xf32, #tpu.memory_space<vmem>>, vector<1x1x8xf32>,
      %141 = arith.truncf %29 : vector<8x32xf32> to vector<8x32xbf16>
      %cst_79 = arith.constant 0.000000e+00 : f32
      %142 = vector.broadcast %cst_79 : f32 to vector<8x32xf32>
      %cst_80 = arith.constant 0.000000e+00 : bf16
      %143 = vector.broadcast %cst_80 : bf16 to vector<1x32xbf16>
      %144 = vector.extract_strided_slice %141 {offsets = [0, 0], sizes = [7, 32], strides = [1, 1]} : vector<8x32xbf16> to vector<7x32xbf16>
      %145 = tpu.concatenate %143, %144 in 0 : vector<1x32xbf16>, vector<7x32xbf16> -> vector<8x32xbf16>
      %c0_81 = arith.constant 0 : index
      %c0_82 = arith.constant 0 : index
      %c0_83 = arith.constant 0 : index
      %146 = vector.load %arg18[%c0_81, %c0_82, %c0_83] : memref<3x32x32xbf16, #tpu.memory_space<vmem>>, vector<1x32x32xbf16>
      %147 = vector.shape_cast %146 : vector<1x32x32xbf16> to vector<32x32xbf16>
      %cst_84 = arith.constant dense<0.000000e+00> : vector<8x32xf32>
      %148 = tpu.matmul %145, %147, %cst_84 {dimension_numbers = #tpu.dot_dimension_numbers<[1], [0], [0], [1], [0, 0, 1, 1], [], []>} : vector<8x32xbf16>, vector<32x32xbf16>, vector<8x32xf32> -> vector<8x32xf32>
      %149 = arith.addf %142, %148 : vector<8x32xf32>
      %c1_85 = arith.constant 1 : index
      %c0_86 = arith.constant 0 : index
      %c0_87 = arith.constant 0 : index
      %150 = vector.load %arg18[%c1_85, %c0_86, %c0_87] : memref<3x32x32xbf16, #tpu.memory_space<vmem>>, vector<1x32x32xbf16>
      %151 = vector.shape_cast %150 : vector<1x32x32xbf16> to vector<32x32xbf16>
      %cst_88 = arith.constant dense<0.000000e+00> : vector<8x32xf32>
      %152 = tpu.matmul %141, %151, %cst_88 {dimension_numbers = #tpu.dot_dimension_numbers<[1], [0], [0], [1], [0, 0, 1, 1], [], []>} : vector<8x32xbf16>, vector<32x32xbf16>, vector<8x32xf32> -> vector<8x32xf32>
      %153 = arith.addf %149, %152 : vector<8x32xf32>
      %cst_89 = arith.constant 0.000000e+00 : bf16
      %154 = vector.broadcast %cst_89 : bf16 to vector<1x32xbf16>
      %155 = vector.extract_strided_slice %141 {offsets = [1, 0], sizes = [7, 32], strides = [1, 1]} : vector<8x32xbf16> to vector<7x32xbf16>
      %156 = tpu.concatenate %155, %154 in 0 : vector<7x32xbf16>, vector<1x32xbf16> -> vector<8x32xbf16>
      %c2_90 = arith.constant 2 : index
      %c0_91 = arith.constant 0 : index
      %c0_92 = arith.constant 0 : index
      %157 = vector.load %arg18[%c2_90, %c0_91, %c0_92] : memref<3x32x32xbf16, #tpu.memory_space<vmem>>, vector<1x32x32xbf16>
      %158 = vector.shape_cast %157 : vector<1x32x32xbf16> to vector<32x32xbf16>
      %cst_93 = arith.constant dense<0.000000e+00> : vector<8x32xf32>
      %159 = tpu.matmul %156, %158, %cst_93 {dimension_numbers = #tpu.dot_dimension_numbers<[1], [0], [0], [1], [0, 0, 1, 1], [], []>} : vector<8x32xbf16>, vector<32x32xbf16>, vector<8x32xf32> -> vector<8x32xf32>
      %160 = arith.addf %153, %159 : vector<8x32xf32>
      %c0_94 = arith.constant 0 : index
      %c0_95 = arith.constant 0 : index
      %161 = vector.load %arg19[%c0_94, %c0_95] : memref<1x32xf32, #tpu.memory_space<vmem>>, vector<1x32xf32>
      %162 = vector.broadcast %161 : vector<1x32xf32> to vector<8x32xf32>
      %163 = arith.addf %160, %162 : vector<8x32xf32>
      %cst_96 = arith.constant 0.000000e+00 : f32
      %164 = vector.broadcast %cst_96 : f32 to vector<8x32xf32>
      %165 = arith.maximumf %163, %164 : vector<8x32xf32>
      %cst_97 = arith.constant dense<0.000000e+00> : vector<8xf32>
      %166 = vector.multi_reduction <add>, %165, %cst_97 [1] : vector<8x32xf32> to vector<8xf32>
      %167 = vector.shape_cast %166 : vector<8xf32> to vector<8x1xf32>
      %cst_98 = arith.constant 3.200000e+01 : f32
      %168 = vector.broadcast %cst_98 : f32 to vector<8x1xf32>
      %169 = arith.divf %167, %168 : vector<8x1xf32>
      %170 = vector.broadcast %169 : vector<8x1xf32> to vector<8x32xf32>
      %171 = arith.subf %165, %170 : vector<8x32xf32>
      %172 = arith.mulf %171, %171 : vector<8x32xf32>
      %cst_99 = arith.constant dense<0.000000e+00> : vector<8xf32>
      %173 = vector.multi_reduction <add>, %172, %cst_99 [1] : vector<8x32xf32> to vector<8xf32>
      %174 = vector.shape_cast %173 : vector<8xf32> to vector<8x1xf32>
      %cst_100 = arith.constant 3.200000e+01 : f32
      %175 = vector.broadcast %cst_100 : f32 to vector<8x1xf32>
      %176 = arith.divf %174, %175 : vector<8x1xf32>
      %177 = vector.broadcast %169 : vector<8x1xf32> to vector<8x32xf32>
      %178 = arith.subf %165, %177 : vector<8x32xf32>
      %cst_101 = arith.constant 9.99999974E-6 : f32
      %179 = vector.broadcast %cst_101 : f32 to vector<8x1xf32>
      %180 = arith.addf %176, %179 : vector<8x1xf32>
      %181 = math.rsqrt %180 : vector<8x1xf32>
      %182 = vector.broadcast %181 : vector<8x1xf32> to vector<8x32xf32>
      %183 = arith.mulf %178, %182 : vector<8x32xf32>
      %c0_102 = arith.constant 0 : index
      %c0_103 = arith.constant 0 : index
      %184 = vector.load %arg20[%c0_102, %c0_103] : memref<1x32xf32, #tpu.memory_space<vmem>>, vector<1x32xf32>
      %185 = vector.broadcast %184 : vector<1x32xf32> to vector<8x32xf32>
      %186 = arith.mulf %183, %185 : vector<8x32xf32>
      %c0_104 = arith.constant 0 : index
      %c0_105 = arith.constant 0 : index
      %187 = vector.load %arg21[%c0_104, %c0_105] : memref<1x32xf32, #tpu.memory_space<vmem>>, vector<1x32xf32>
      %188 = vector.broadcast %187 : vector<1x32xf32> to vector<8x32xf32>
      %189 = arith.addf %186, %188 : vector<8x32xf32>
      %190 = arith.truncf %189 : vector<8x32xf32> to vector<8x32xbf16>
      %cst_106 = arith.constant 0.000000e+00 : f32
      %191 = vector.broadcast %cst_106 : f32 to vector<8x32xf32>
      %cst_107 = arith.constant 0.000000e+00 : bf16
      %192 = vector.broadcast %cst_107 : bf16 to vector<1x32xbf16>
      %193 = vector.extract_strided_slice %190 {offsets = [0, 0], sizes = [7, 32], strides = [1, 1]} : vector<8x32xbf16> to vector<7x32xbf16>
      %194 = tpu.concatenate %192, %193 in 0 : vector<1x32xbf16>, vector<7x32xbf16> -> vector<8x32xbf16>
      %c0_108 = arith.constant 0 : index
      %c0_109 = arith.constant 0 : index
      %c0_110 = arith.constant 0 : index
      %195 = vector.load %arg22[%c0_108, %c0_109, %c0_110] : memref<3x32x32xbf16, #tpu.memory_space<vmem>>, vector<1x32x32xbf16>
      %196 = vector.shape_cast %195 : vector<1x32x32xbf16> to vector<32x32xbf16>
      %cst_111 = arith.constant dense<0.000000e+00> : vector<8x32xf32>
      %197 = tpu.matmul %194, %196, %cst_111 {dimension_numbers = #tpu.dot_dimension_numbers<[1], [0], [0], [1], [0, 0, 1, 1], [], []>} : vector<8x32xbf16>, vector<32x32xbf16>, vector<8x32xf32> -> vector<8x32xf32>
      %198 = arith.addf %191, %197 : vector<8x32xf32>
      %c1_112 = arith.constant 1 : index
      %c0_113 = arith.constant 0 : index
      %c0_114 = arith.constant 0 : index
      %199 = vector.load %arg22[%c1_112, %c0_113, %c0_114] : memref<3x32x32xbf16, #tpu.memory_space<vmem>>, vector<1x32x32xbf16>
      %200 = vector.shape_cast %199 : vector<1x32x32xbf16> to vector<32x32xbf16>
      %cst_115 = arith.constant dense<0.000000e+00> : vector<8x32xf32>
      %201 = tpu.matmul %190, %200, %cst_115 {dimension_numbers = #tpu.dot_dimension_numbers<[1], [0], [0], [1], [0, 0, 1, 1], [], []>} : vector<8x32xbf16>, vector<32x32xbf16>, vector<8x32xf32> -> vector<8x32xf32>
      %202 = arith.addf %198, %201 : vector<8x32xf32>
      %cst_116 = arith.constant 0.000000e+00 : bf16
      %203 = vector.broadcast %cst_116 : bf16 to vector<1x32xbf16>
      %204 = vector.extract_strided_slice %190 {offsets = [1, 0], sizes = [7, 32], strides = [1, 1]} : vector<8x32xbf16> to vector<7x32xbf16>
      %205 = tpu.concatenate %204, %203 in 0 : vector<7x32xbf16>, vector<1x32xbf16> -> vector<8x32xbf16>
      %c2_117 = arith.constant 2 : index
      %c0_118 = arith.constant 0 : index
      %c0_119 = arith.constant 0 : index
      %206 = vector.load %arg22[%c2_117, %c0_118, %c0_119] : memref<3x32x32xbf16, #tpu.memory_space<vmem>>, vector<1x32x32xbf16>
      %207 = vector.shape_cast %206 : vector<1x32x32xbf16> to vector<32x32xbf16>
      %cst_120 = arith.constant dense<0.000000e+00> : vector<8x32xf32>
      %208 = tpu.matmul %205, %207, %cst_120 {dimension_numbers = #tpu.dot_dimension_numbers<[1], [0], [0], [1], [0, 0, 1, 1], [], []>} : vector<8x32xbf16>, vector<32x32xbf16>, vector<8x32xf32> -> vector<8x32xf32>
      %209 = arith.addf %202, %208 : vector<8x32xf32>
      %c0_121 = arith.constant 0 : index
      %c0_122 = arith.constant 0 : index
      %210 = vector.load %arg23[%c0_121, %c0_122] : memref<1x32xf32, #tpu.memory_space<vmem>>, vector<1x32xf32>
      %211 = vector.broadcast %210 : vector<1x32xf32> to vector<8x32xf32>
      %212 = arith.addf %209, %211 : vector<8x32xf32>
      %cst_123 = arith.constant 0.000000e+00 : f32
      %213 = vector.broadcast %cst_123 : f32 to vector<8x32xf32>
      %214 = arith.maximumf %212, %213 : vector<8x32xf32>
      %cst_124 = arith.constant dense<0.000000e+00> : vector<8xf32>
      %215 = vector.multi_reduction <add>, %214, %cst_124 [1] : vector<8x32xf32> to vector<8xf32>
      %216 = vector.shape_cast %215 : vector<8xf32> to vector<8x1xf32>
      %cst_125 = arith.constant 3.200000e+01 : f32
      %217 = vector.broadcast %cst_125 : f32 to vector<8x1xf32>
      %218 = arith.divf %216, %217 : vector<8x1xf32>
      %219 = vector.broadcast %218 : vector<8x1xf32> to vector<8x32xf32>
      %220 = arith.subf %214, %219 : vector<8x32xf32>
      %221 = arith.mulf %220, %220 : vector<8x32xf32>
      %cst_126 = arith.constant dense<0.000000e+00> : vector<8xf32>
      %222 = vector.multi_reduction <add>, %221, %cst_126 [1] : vector<8x32xf32> to vector<8xf32>
      %223 = vector.shape_cast %222 : vector<8xf32> to vector<8x1xf32>
      %cst_127 = arith.constant 3.200000e+01 : f32
      %224 = vector.broadcast %cst_127 : f32 to vector<8x1xf32>
      %225 = arith.divf %223, %224 : vector<8x1xf32>
      %226 = vector.broadcast %218 : vector<8x1xf32> to vector<8x32xf32>
      %227 = arith.subf %214, %226 : vector<8x32xf32>
      %cst_128 = arith.constant 9.99999974E-6 : f32
      %228 = vector.broadcast %cst_128 : f32 to vector<8x1xf32>
      %229 = arith.addf %225, %228 : vector<8x1xf32>
      %230 = math.rsqrt %229 : vector<8x1xf32>
      %231 = vector.broadcast %230 : vector<8x1xf32> to vector<8x32xf32>
      %232 = arith.mulf %227, %231 : vector<8x32xf32>
      %c0_129 = arith.constant 0 : index
      %c0_130 = arith.constant 0 : index
      %233 = vector.load %arg24[%c0_129, %c0_130] : memref<1x32xf32, #tpu.memory_space<vmem>>, vector<1x32xf32>
      %234 = vector.broadcast %233 : vector<1x32xf32> to vector<8x32xf32>
      %235 = arith.mulf %232, %234 : vector<8x32xf32>
      %c0_131 = arith.constant 0 : index
      %c0_132 = arith.constant 0 : index
      %236 = vector.load %arg25[%c0_131, %c0_132] : memref<1x32xf32, #tpu.memory_space<vmem>>, vector<1x32xf32>
      %237 = vector.broadcast %236 : vector<1x32xf32> to vector<8x32xf32>
      %238 = arith.addf %235, %237 : vector<8x32xf32>
      %c0_133 = arith.constant 0 : index
      %c0_134 = arith.constant 0 : index
      %239 = vector.load %arg26[%c0_133, %c0_134] : memref<1x32xbf16, #tpu.memory_space<vmem>>, vector<1x32xbf16>
      %240 = arith.truncf %238 : vector<8x32xf32> to vector<8x32xbf16>
      %cst_135 = arith.constant dense<0.000000e+00> : vector<1x8xf32>
      %241 = tpu.matmul %239, %240, %cst_135 {dimension_numbers = #tpu.dot_dimension_numbers<[1], [1], [0], [0], [0, 0, 1, 0], [], []>} : vector<1x32xbf16>, vector<8x32xbf16>, vector<1x8xf32> -> vector<1x8xf32>
      %c0_136 = arith.constant 0 : index
      %c0_137 = arith.constant 0 : index
      %242 = vector.load %arg27[%c0_136, %c0_137] : memref<1x1xf32, #tpu.memory_space<vmem>>, vector<1x1xf32>
      %243 = vector.broadcast %242 : vector<1x1xf32> to vector<1x8xf32>
      %244 = arith.addf %241, %243 : vector<1x8xf32>
      %c0_i32_138 = arith.constant 0 : i32
      %245 = vector.broadcast %c0_i32_138 : i32 to vector<1x8xi32>
      %246 = arith.cmpi sgt, %1, %245 : vector<1x8xi32>
      %cst_139 = arith.constant 0.000000e+00 : f32
      %247 = vector.broadcast %cst_139 : f32 to vector<1x8xf32>
      %248 = arith.select %246, %247, %244 : vector<1x8xi1>, vector<1x8xf32>
      %c0_140 = arith.constant 0 : index
      %c0_141 = arith.constant 0 : index
      %c0_142 = arith.constant 0 : index
      %249 = vector.load %arg43[%c0_140, %c0_141, %c0_142] : memref<1x1x8xf32, #tpu.memory_space<vmem>>, vector<1x1x8xf32>
      %250 = vector.shape_cast %249 : vector<1x1x8xf32> to vector<1x8xf32>
      %251 = vector.shape_cast %248 : vector<1x8xf32> to vector<1x1x8xf32>
      tpu.vector_store %arg43[%c0_140, %c0_141, %c0_142], %251 {strides = array<i32>} : memref<1x1x8xf32, #tpu.memory_space<vmem>>, vector<1x1x8xf32>,
      %c0_143 = arith.constant 0 : index
      %c0_144 = arith.constant 0 : index
      %c0_145 = arith.constant 0 : index
      %252 = vector.load %arg4[%c0_143, %c0_144, %c0_145] : memref<1x8x1xf32, #tpu.memory_space<vmem>>, vector<1x8x1xf32>
      %253 = vector.shape_cast %252 : vector<1x8x1xf32> to vector<8x1xf32>
      %c0_146 = arith.constant 0 : index
      %c0_147 = arith.constant 0 : index
      %254 = vector.load %arg38[%c0_146, %c0_147] : memref<1x15xf32, #tpu.memory_space<vmem>>, vector<1x15xf32>
      %255 = vector.broadcast %253 : vector<8x1xf32> to vector<8x15xf32>
      %256 = vector.broadcast %254 : vector<1x15xf32> to vector<8x15xf32>
      %257 = arith.cmpf ogt, %255, %256 : vector<8x15xf32>
      %258 = arith.extui %257 : vector<8x15xi1> to vector<8x15xi32>
      %cst_148 = arith.constant dense<0> : vector<8xi32>
      %259 = vector.multi_reduction <add>, %258, %cst_148 [1] : vector<8x15xi32> to vector<8xi32>
      %260 = vector.shape_cast %259 : vector<8xi32> to vector<8x1xi32>
      %261 = tpu.iota {dimensions = array<i32: 1>} : vector<8x16xi32>
      %262 = vector.broadcast %260 : vector<8x1xi32> to vector<8x16xi32>
      %263 = arith.cmpi eq, %261, %262 : vector<8x16xi32>
      %264 = arith.extui %263 : vector<8x16xi1> to vector<8x16xi32>
      %265 = arith.sitofp %264 : vector<8x16xi32> to vector<8x16xf32>
      %266 = arith.truncf %265 : vector<8x16xf32> to vector<8x16xbf16>
      %c0_149 = arith.constant 0 : index
      %c0_150 = arith.constant 0 : index
      %267 = vector.load %arg39[%c0_149, %c0_150] : memref<16x32xbf16, #tpu.memory_space<vmem>>, vector<16x32xbf16>
      %cst_151 = arith.constant dense<0.000000e+00> : vector<8x32xf32>
      %268 = tpu.matmul %266, %267, %cst_151 {dimension_numbers = #tpu.dot_dimension_numbers<[1], [0], [0], [1], [0, 0, 1, 1], [], []>} : vector<8x16xbf16>, vector<16x32xbf16>, vector<8x32xf32> -> vector<8x32xf32>
      %269 = arith.addf %29, %268 : vector<8x32xf32>
      %270 = arith.truncf %269 : vector<8x32xf32> to vector<8x32xbf16>
      %cst_152 = arith.constant 0.000000e+00 : f32
      %271 = vector.broadcast %cst_152 : f32 to vector<8x32xf32>
      %cst_153 = arith.constant 0.000000e+00 : bf16
      %272 = vector.broadcast %cst_153 : bf16 to vector<1x32xbf16>
      %273 = vector.extract_strided_slice %270 {offsets = [0, 0], sizes = [7, 32], strides = [1, 1]} : vector<8x32xbf16> to vector<7x32xbf16>
      %274 = tpu.concatenate %272, %273 in 0 : vector<1x32xbf16>, vector<7x32xbf16> -> vector<8x32xbf16>
      %c0_154 = arith.constant 0 : index
      %c0_155 = arith.constant 0 : index
      %c0_156 = arith.constant 0 : index
      %275 = vector.load %arg28[%c0_154, %c0_155, %c0_156] : memref<3x32x32xbf16, #tpu.memory_space<vmem>>, vector<1x32x32xbf16>
      %276 = vector.shape_cast %275 : vector<1x32x32xbf16> to vector<32x32xbf16>
      %cst_157 = arith.constant dense<0.000000e+00> : vector<8x32xf32>
      %277 = tpu.matmul %274, %276, %cst_157 {dimension_numbers = #tpu.dot_dimension_numbers<[1], [0], [0], [1], [0, 0, 1, 1], [], []>} : vector<8x32xbf16>, vector<32x32xbf16>, vector<8x32xf32> -> vector<8x32xf32>
      %278 = arith.addf %271, %277 : vector<8x32xf32>
      %c1_158 = arith.constant 1 : index
      %c0_159 = arith.constant 0 : index
      %c0_160 = arith.constant 0 : index
      %279 = vector.load %arg28[%c1_158, %c0_159, %c0_160] : memref<3x32x32xbf16, #tpu.memory_space<vmem>>, vector<1x32x32xbf16>
      %280 = vector.shape_cast %279 : vector<1x32x32xbf16> to vector<32x32xbf16>
      %cst_161 = arith.constant dense<0.000000e+00> : vector<8x32xf32>
      %281 = tpu.matmul %270, %280, %cst_161 {dimension_numbers = #tpu.dot_dimension_numbers<[1], [0], [0], [1], [0, 0, 1, 1], [], []>} : vector<8x32xbf16>, vector<32x32xbf16>, vector<8x32xf32> -> vector<8x32xf32>
      %282 = arith.addf %278, %281 : vector<8x32xf32>
      %cst_162 = arith.constant 0.000000e+00 : bf16
      %283 = vector.broadcast %cst_162 : bf16 to vector<1x32xbf16>
      %284 = vector.extract_strided_slice %270 {offsets = [1, 0], sizes = [7, 32], strides = [1, 1]} : vector<8x32xbf16> to vector<7x32xbf16>
      %285 = tpu.concatenate %284, %283 in 0 : vector<7x32xbf16>, vector<1x32xbf16> -> vector<8x32xbf16>
      %c2_163 = arith.constant 2 : index
      %c0_164 = arith.constant 0 : index
      %c0_165 = arith.constant 0 : index
      %286 = vector.load %arg28[%c2_163, %c0_164, %c0_165] : memref<3x32x32xbf16, #tpu.memory_space<vmem>>, vector<1x32x32xbf16>
      %287 = vector.shape_cast %286 : vector<1x32x32xbf16> to vector<32x32xbf16>
      %cst_166 = arith.constant dense<0.000000e+00> : vector<8x32xf32>
      %288 = tpu.matmul %285, %287, %cst_166 {dimension_numbers = #tpu.dot_dimension_numbers<[1], [0], [0], [1], [0, 0, 1, 1], [], []>} : vector<8x32xbf16>, vector<32x32xbf16>, vector<8x32xf32> -> vector<8x32xf32>
      %289 = arith.addf %282, %288 : vector<8x32xf32>
      %c0_167 = arith.constant 0 : index
      %c0_168 = arith.constant 0 : index
      %290 = vector.load %arg29[%c0_167, %c0_168] : memref<1x32xf32, #tpu.memory_space<vmem>>, vector<1x32xf32>
      %291 = vector.broadcast %290 : vector<1x32xf32> to vector<8x32xf32>
      %292 = arith.addf %289, %291 : vector<8x32xf32>
      %cst_169 = arith.constant 0.000000e+00 : f32
      %293 = vector.broadcast %cst_169 : f32 to vector<8x32xf32>
      %294 = arith.maximumf %292, %293 : vector<8x32xf32>
      %cst_170 = arith.constant dense<0.000000e+00> : vector<8xf32>
      %295 = vector.multi_reduction <add>, %294, %cst_170 [1] : vector<8x32xf32> to vector<8xf32>
      %296 = vector.shape_cast %295 : vector<8xf32> to vector<8x1xf32>
      %cst_171 = arith.constant 3.200000e+01 : f32
      %297 = vector.broadcast %cst_171 : f32 to vector<8x1xf32>
      %298 = arith.divf %296, %297 : vector<8x1xf32>
      %299 = vector.broadcast %298 : vector<8x1xf32> to vector<8x32xf32>
      %300 = arith.subf %294, %299 : vector<8x32xf32>
      %301 = arith.mulf %300, %300 : vector<8x32xf32>
      %cst_172 = arith.constant dense<0.000000e+00> : vector<8xf32>
      %302 = vector.multi_reduction <add>, %301, %cst_172 [1] : vector<8x32xf32> to vector<8xf32>
      %303 = vector.shape_cast %302 : vector<8xf32> to vector<8x1xf32>
      %cst_173 = arith.constant 3.200000e+01 : f32
      %304 = vector.broadcast %cst_173 : f32 to vector<8x1xf32>
      %305 = arith.divf %303, %304 : vector<8x1xf32>
      %306 = vector.broadcast %298 : vector<8x1xf32> to vector<8x32xf32>
      %307 = arith.subf %294, %306 : vector<8x32xf32>
      %cst_174 = arith.constant 9.99999974E-6 : f32
      %308 = vector.broadcast %cst_174 : f32 to vector<8x1xf32>
      %309 = arith.addf %305, %308 : vector<8x1xf32>
      %310 = math.rsqrt %309 : vector<8x1xf32>
      %311 = vector.broadcast %310 : vector<8x1xf32> to vector<8x32xf32>
      %312 = arith.mulf %307, %311 : vector<8x32xf32>
      %c0_175 = arith.constant 0 : index
      %c0_176 = arith.constant 0 : index
      %313 = vector.load %arg30[%c0_175, %c0_176] : memref<1x32xf32, #tpu.memory_space<vmem>>, vector<1x32xf32>
      %314 = vector.broadcast %313 : vector<1x32xf32> to vector<8x32xf32>
      %315 = arith.mulf %312, %314 : vector<8x32xf32>
      %c0_177 = arith.constant 0 : index
      %c0_178 = arith.constant 0 : index
      %316 = vector.load %arg31[%c0_177, %c0_178] : memref<1x32xf32, #tpu.memory_space<vmem>>, vector<1x32xf32>
      %317 = vector.broadcast %316 : vector<1x32xf32> to vector<8x32xf32>
      %318 = arith.addf %315, %317 : vector<8x32xf32>
      %319 = arith.truncf %318 : vector<8x32xf32> to vector<8x32xbf16>
      %cst_179 = arith.constant 0.000000e+00 : f32
      %320 = vector.broadcast %cst_179 : f32 to vector<8x32xf32>
      %cst_180 = arith.constant 0.000000e+00 : bf16
      %321 = vector.broadcast %cst_180 : bf16 to vector<1x32xbf16>
      %322 = vector.extract_strided_slice %319 {offsets = [0, 0], sizes = [7, 32], strides = [1, 1]} : vector<8x32xbf16> to vector<7x32xbf16>
      %323 = tpu.concatenate %321, %322 in 0 : vector<1x32xbf16>, vector<7x32xbf16> -> vector<8x32xbf16>
      %c0_181 = arith.constant 0 : index
      %c0_182 = arith.constant 0 : index
      %c0_183 = arith.constant 0 : index
      %324 = vector.load %arg32[%c0_181, %c0_182, %c0_183] : memref<3x32x32xbf16, #tpu.memory_space<vmem>>, vector<1x32x32xbf16>
      %325 = vector.shape_cast %324 : vector<1x32x32xbf16> to vector<32x32xbf16>
      %cst_184 = arith.constant dense<0.000000e+00> : vector<8x32xf32>
      %326 = tpu.matmul %323, %325, %cst_184 {dimension_numbers = #tpu.dot_dimension_numbers<[1], [0], [0], [1], [0, 0, 1, 1], [], []>} : vector<8x32xbf16>, vector<32x32xbf16>, vector<8x32xf32> -> vector<8x32xf32>
      %327 = arith.addf %320, %326 : vector<8x32xf32>
      %c1_185 = arith.constant 1 : index
      %c0_186 = arith.constant 0 : index
      %c0_187 = arith.constant 0 : index
      %328 = vector.load %arg32[%c1_185, %c0_186, %c0_187] : memref<3x32x32xbf16, #tpu.memory_space<vmem>>, vector<1x32x32xbf16>
      %329 = vector.shape_cast %328 : vector<1x32x32xbf16> to vector<32x32xbf16>
      %cst_188 = arith.constant dense<0.000000e+00> : vector<8x32xf32>
      %330 = tpu.matmul %319, %329, %cst_188 {dimension_numbers = #tpu.dot_dimension_numbers<[1], [0], [0], [1], [0, 0, 1, 1], [], []>} : vector<8x32xbf16>, vector<32x32xbf16>, vector<8x32xf32> -> vector<8x32xf32>
      %331 = arith.addf %327, %330 : vector<8x32xf32>
      %cst_189 = arith.constant 0.000000e+00 : bf16
      %332 = vector.broadcast %cst_189 : bf16 to vector<1x32xbf16>
      %333 = vector.extract_strided_slice %319 {offsets = [1, 0], sizes = [7, 32], strides = [1, 1]} : vector<8x32xbf16> to vector<7x32xbf16>
      %334 = tpu.concatenate %333, %332 in 0 : vector<7x32xbf16>, vector<1x32xbf16> -> vector<8x32xbf16>
      %c2_190 = arith.constant 2 : index
      %c0_191 = arith.constant 0 : index
      %c0_192 = arith.constant 0 : index
      %335 = vector.load %arg32[%c2_190, %c0_191, %c0_192] : memref<3x32x32xbf16, #tpu.memory_space<vmem>>, vector<1x32x32xbf16>
      %336 = vector.shape_cast %335 : vector<1x32x32xbf16> to vector<32x32xbf16>
      %cst_193 = arith.constant dense<0.000000e+00> : vector<8x32xf32>
      %337 = tpu.matmul %334, %336, %cst_193 {dimension_numbers = #tpu.dot_dimension_numbers<[1], [0], [0], [1], [0, 0, 1, 1], [], []>} : vector<8x32xbf16>, vector<32x32xbf16>, vector<8x32xf32> -> vector<8x32xf32>
      %338 = arith.addf %331, %337 : vector<8x32xf32>
      %c0_194 = arith.constant 0 : index
      %c0_195 = arith.constant 0 : index
      %339 = vector.load %arg33[%c0_194, %c0_195] : memref<1x32xf32, #tpu.memory_space<vmem>>, vector<1x32xf32>
      %340 = vector.broadcast %339 : vector<1x32xf32> to vector<8x32xf32>
      %341 = arith.addf %338, %340 : vector<8x32xf32>
      %cst_196 = arith.constant 0.000000e+00 : f32
      %342 = vector.broadcast %cst_196 : f32 to vector<8x32xf32>
      %343 = arith.maximumf %341, %342 : vector<8x32xf32>
      %cst_197 = arith.constant dense<0.000000e+00> : vector<8xf32>
      %344 = vector.multi_reduction <add>, %343, %cst_197 [1] : vector<8x32xf32> to vector<8xf32>
      %345 = vector.shape_cast %344 : vector<8xf32> to vector<8x1xf32>
      %cst_198 = arith.constant 3.200000e+01 : f32
      %346 = vector.broadcast %cst_198 : f32 to vector<8x1xf32>
      %347 = arith.divf %345, %346 : vector<8x1xf32>
      %348 = vector.broadcast %347 : vector<8x1xf32> to vector<8x32xf32>
      %349 = arith.subf %343, %348 : vector<8x32xf32>
      %350 = arith.mulf %349, %349 : vector<8x32xf32>
      %cst_199 = arith.constant dense<0.000000e+00> : vector<8xf32>
      %351 = vector.multi_reduction <add>, %350, %cst_199 [1] : vector<8x32xf32> to vector<8xf32>
      %352 = vector.shape_cast %351 : vector<8xf32> to vector<8x1xf32>
      %cst_200 = arith.constant 3.200000e+01 : f32
      %353 = vector.broadcast %cst_200 : f32 to vector<8x1xf32>
      %354 = arith.divf %352, %353 : vector<8x1xf32>
      %355 = vector.broadcast %347 : vector<8x1xf32> to vector<8x32xf32>
      %356 = arith.subf %343, %355 : vector<8x32xf32>
      %cst_201 = arith.constant 9.99999974E-6 : f32
      %357 = vector.broadcast %cst_201 : f32 to vector<8x1xf32>
      %358 = arith.addf %354, %357 : vector<8x1xf32>
      %359 = math.rsqrt %358 : vector<8x1xf32>
      %360 = vector.broadcast %359 : vector<8x1xf32> to vector<8x32xf32>
      %361 = arith.mulf %356, %360 : vector<8x32xf32>
      %c0_202 = arith.constant 0 : index
      %c0_203 = arith.constant 0 : index
      %362 = vector.load %arg34[%c0_202, %c0_203] : memref<1x32xf32, #tpu.memory_space<vmem>>, vector<1x32xf32>
      %363 = vector.broadcast %362 : vector<1x32xf32> to vector<8x32xf32>
      %364 = arith.mulf %361, %363 : vector<8x32xf32>
      %c0_204 = arith.constant 0 : index
      %c0_205 = arith.constant 0 : index
      %365 = vector.load %arg35[%c0_204, %c0_205] : memref<1x32xf32, #tpu.memory_space<vmem>>, vector<1x32xf32>
      %366 = vector.broadcast %365 : vector<1x32xf32> to vector<8x32xf32>
      %367 = arith.addf %364, %366 : vector<8x32xf32>
      %c0_206 = arith.constant 0 : index
      %c0_207 = arith.constant 0 : index
      %368 = vector.load %arg36[%c0_206, %c0_207] : memref<1x32xbf16, #tpu.memory_space<vmem>>, vector<1x32xbf16>
      %369 = arith.truncf %367 : vector<8x32xf32> to vector<8x32xbf16>
      %cst_208 = arith.constant dense<0.000000e+00> : vector<1x8xf32>
      %370 = tpu.matmul %368, %369, %cst_208 {dimension_numbers = #tpu.dot_dimension_numbers<[1], [1], [0], [0], [0, 0, 1, 0], [], []>} : vector<1x32xbf16>, vector<8x32xbf16>, vector<1x8xf32> -> vector<1x8xf32>
      %c0_209 = arith.constant 0 : index
      %c0_210 = arith.constant 0 : index
      %371 = vector.load %arg37[%c0_209, %c0_210] : memref<1x1xf32, #tpu.memory_space<vmem>>, vector<1x1xf32>
      %372 = vector.broadcast %371 : vector<1x1xf32> to vector<1x8xf32>
      %373 = arith.addf %370, %372 : vector<1x8xf32>
      %c0_i32_211 = arith.constant 0 : i32
      %374 = vector.broadcast %c0_i32_211 : i32 to vector<1x8xi32>
      %375 = arith.cmpi sgt, %1, %374 : vector<1x8xi32>
      %cst_212 = arith.constant 0.000000e+00 : f32
      %376 = vector.broadcast %cst_212 : f32 to vector<1x8xf32>
      %377 = arith.select %375, %376, %373 : vector<1x8xi1>, vector<1x8xf32>
      %c0_213 = arith.constant 0 : index
      %c0_214 = arith.constant 0 : index
      %c0_215 = arith.constant 0 : index
      %378 = vector.load %arg44[%c0_213, %c0_214, %c0_215] : memref<1x1x8xf32, #tpu.memory_space<vmem>>, vector<1x1x8xf32>
      %379 = vector.shape_cast %378 : vector<1x1x8xf32> to vector<1x8xf32>
      %380 = vector.shape_cast %377 : vector<1x8xf32> to vector<1x1x8xf32>
      tpu.vector_store %arg44[%c0_213, %c0_214, %c0_215], %380 {strides = array<i32>} : memref<1x1x8xf32, #tpu.memory_space<vmem>>, vector<1x1x8xf32>,
      %c0_216 = arith.constant 0 : index
      %c0_217 = arith.constant 0 : index
      %c0_218 = arith.constant 0 : index
      %381 = vector.load %arg5[%c0_216, %c0_217, %c0_218] : memref<1x8x1xf32, #tpu.memory_space<vmem>>, vector<1x8x1xf32>
      %382 = vector.shape_cast %381 : vector<1x8x1xf32> to vector<8x1xf32>
      %c0_219 = arith.constant 0 : index
      %c0_220 = arith.constant 0 : index
      %383 = vector.load %arg40[%c0_219, %c0_220] : memref<1x15xf32, #tpu.memory_space<vmem>>, vector<1x15xf32>
      %384 = vector.broadcast %382 : vector<8x1xf32> to vector<8x15xf32>
      %385 = vector.broadcast %383 : vector<1x15xf32> to vector<8x15xf32>
      %386 = arith.cmpf ogt, %384, %385 : vector<8x15xf32>
      %387 = arith.extui %386 : vector<8x15xi1> to vector<8x15xi32>
      %cst_221 = arith.constant dense<0> : vector<8xi32>
      %388 = vector.multi_reduction <add>, %387, %cst_221 [1] : vector<8x15xi32> to vector<8xi32>
      %389 = vector.shape_cast %388 : vector<8xi32> to vector<8x1xi32>
      %390 = tpu.iota {dimensions = array<i32: 1>} : vector<8x16xi32>
      %391 = vector.broadcast %389 : vector<8x1xi32> to vector<8x16xi32>
      %392 = arith.cmpi eq, %390, %391 : vector<8x16xi32>
      %393 = arith.extui %392 : vector<8x16xi1> to vector<8x16xi32>
      %394 = arith.sitofp %393 : vector<8x16xi32> to vector<8x16xf32>
      %395 = arith.truncf %394 : vector<8x16xf32> to vector<8x16xbf16>
      %c0_222 = arith.constant 0 : index
      %c0_223 = arith.constant 0 : index
      %396 = vector.load %arg41[%c0_222, %c0_223] : memref<16x32xbf16, #tpu.memory_space<vmem>>, vector<16x32xbf16>
      %cst_224 = arith.constant dense<0.000000e+00> : vector<8x32xf32>
      %397 = tpu.matmul %395, %396, %cst_224 {dimension_numbers = #tpu.dot_dimension_numbers<[1], [0], [0], [1], [0, 0, 1, 1], [], []>} : vector<8x16xbf16>, vector<16x32xbf16>, vector<8x32xf32> -> vector<8x32xf32>
      %398 = arith.addf %269, %397 : vector<8x32xf32>
      %399 = arith.truncf %398 : vector<8x32xf32> to vector<8x32xbf16>
      %c0_225 = arith.constant 0 : index
      %c0_226 = arith.constant 0 : index
      %400 = vector.load %arg46[%c0_225, %c0_226] : memref<8x32xbf16, #tpu.memory_space<vmem>>, vector<8x32xbf16>
      tpu.vector_store %arg46[%c0_225, %c0_226], %399 {strides = array<i32>} : memref<8x32xbf16, #tpu.memory_space<vmem>>, vector<8x32xbf16>,
    } else {
    }
    %c0_3 = arith.constant 0 : index
    %c0_4 = arith.constant 0 : index
    %c0_5 = arith.constant 0 : index
    %5 = vector.load %arg6[%c0_3, %c0_4, %c0_5] : memref<1x1x8xi32, #tpu.memory_space<vmem>>, vector<1x1x8xi32>
    %6 = vector.shape_cast %5 : vector<1x1x8xi32> to vector<1x8xi32>
    %c0_6 = arith.constant 0 : index
    %c0_7 = arith.constant 0 : index
    %c0_8 = arith.constant 0 : index
    %7 = vector.load %arg7[%c0_6, %c0_7, %c0_8] : memref<1x1x8xi32, #tpu.memory_space<vmem>>, vector<1x1x8xi32>
    %8 = vector.shape_cast %7 : vector<1x1x8xi32> to vector<1x8xi32>
    %9 = tpu.iota {dimensions = array<i32: 0>} : vector<8x8xi32>
    %c8_i32 = arith.constant 8 : i32
    %10 = arith.muli %arg1, %c8_i32 : i32
    %11 = vector.broadcast %10 : i32 to vector<8x8xi32>
    %12 = arith.addi %9, %11 : vector<8x8xi32>
    %13 = vector.broadcast %6 : vector<1x8xi32> to vector<8x8xi32>
    %14 = arith.cmpi sge, %12, %13 : vector<8x8xi32>
    %15 = vector.broadcast %8 : vector<1x8xi32> to vector<8x8xi32>
    %16 = arith.cmpi slt, %12, %15 : vector<8x8xi32>
    %17 = arith.andi %14, %16 : vector<8x8xi1>
    %18 = arith.extui %17 : vector<8x8xi1> to vector<8x8xi32>
    %19 = arith.sitofp %18 : vector<8x8xi32> to vector<8x8xf32>
    %20 = arith.truncf %19 : vector<8x8xf32> to vector<8x8xbf16>
    %c0_9 = arith.constant 0 : index
    %c0_10 = arith.constant 0 : index
    %21 = vector.load %arg46[%c0_9, %c0_10] : memref<8x32xbf16, #tpu.memory_space<vmem>>, vector<8x32xbf16>
    %cst = arith.constant dense<0.000000e+00> : vector<8x32xf32>
    %22 = tpu.matmul %20, %21, %cst {dimension_numbers = #tpu.dot_dimension_numbers<[1], [0], [0], [1], [0, 0, 1, 1], [], []>} : vector<8x8xbf16>, vector<8x32xbf16>, vector<8x32xf32> -> vector<8x32xf32>
    %23 = arith.truncf %22 : vector<8x32xf32> to vector<8x32xbf16>
    %c0_11 = arith.constant 0 : index
    %c0_12 = arith.constant 0 : index
    %c0_13 = arith.constant 0 : index
    %24 = vector.load %arg45[%c0_11, %c0_12, %c0_13] : memref<1x8x32xbf16, #tpu.memory_space<vmem>>, vector<1x8x32xbf16>
    %25 = vector.shape_cast %24 : vector<1x8x32xbf16> to vector<8x32xbf16>
    %26 = vector.shape_cast %23 : vector<8x32xbf16> to vector<1x8x32xbf16>
    tpu.vector_store %arg45[%c0_11, %c0_12, %c0_13], %26 {strides = array<i32>} : memref<1x8x32xbf16, #tpu.memory_space<vmem>>, vector<1x8x32xbf16>,
    return
  }
  func.func @transform_0(%arg0: i32, %arg1: i32) -> (i32, i32, i32) {
    %c0_i32 = arith.constant 0 : i32
    %c0_i32_0 = arith.constant 0 : i32
    %c0_i32_1 = arith.constant 0 : i32
    return %arg0, %c0_i32, %c0_i32_0 : i32, i32, i32
  }
  func.func @transform_1(%arg0: i32, %arg1: i32) -> (i32, i32, i32) {
    %c0_i32 = arith.constant 0 : i32
    %c0_i32_0 = arith.constant 0 : i32
    %c0_i32_1 = arith.constant 0 : i32
    return %arg0, %c0_i32, %c0_i32_0 : i32, i32, i32
  }
  func.func @transform_2(%arg0: i32, %arg1: i32) -> (i32, i32, i32) {
    %c0_i32 = arith.constant 0 : i32
    %c0_i32_0 = arith.constant 0 : i32
    %c0_i32_1 = arith.constant 0 : i32
    return %arg0, %c0_i32, %c0_i32_0 : i32, i32, i32
  }
  func.func @transform_3(%arg0: i32, %arg1: i32) -> (i32, i32, i32) {
    %c0_i32 = arith.constant 0 : i32
    %c0_i32_0 = arith.constant 0 : i32
    %c0_i32_1 = arith.constant 0 : i32
    return %arg0, %c0_i32, %c0_i32_0 : i32, i32, i32
  }
  func.func @transform_4(%arg0: i32, %arg1: i32) -> (i32, i32, i32) {
    %c0_i32 = arith.constant 0 : i32
    %c0_i32_0 = arith.constant 0 : i32
    %c0_i32_1 = arith.constant 0 : i32
    return %arg0, %c0_i32, %c0_i32_0 : i32, i32, i32
  }
  func.func @transform_5(%arg0: i32, %arg1: i32) -> (i32, i32, i32) {
    %c0_i32 = arith.constant 0 : i32
    %c0_i32_0 = arith.constant 0 : i32
    %c0_i32_1 = arith.constant 0 : i32
    return %arg0, %c0_i32, %c0_i32_0 : i32, i32, i32
  }
  func.func @transform_6(%arg0: i32, %arg1: i32) -> (i32, i32, i32) {
    %c0_i32 = arith.constant 0 : i32
    %c0_i32_0 = arith.constant 0 : i32
    %c0_i32_1 = arith.constant 0 : i32
    %c0_i32_2 = arith.constant 0 : i32
    return %c0_i32, %c0_i32_0, %c0_i32_1 : i32, i32, i32
  }
  func.func @transform_7(%arg0: i32, %arg1: i32) -> (i32, i32) {
    %c0_i32 = arith.constant 0 : i32
    %c0_i32_0 = arith.constant 0 : i32
    %c0_i32_1 = arith.constant 0 : i32
    return %c0_i32, %c0_i32_0 : i32, i32
  }
  func.func @transform_8(%arg0: i32, %arg1: i32) -> (i32, i32) {
    %c0_i32 = arith.constant 0 : i32
    %c0_i32_0 = arith.constant 0 : i32
    %c0_i32_1 = arith.constant 0 : i32
    return %c0_i32, %c0_i32_0 : i32, i32
  }
  func.func @transform_9(%arg0: i32, %arg1: i32) -> (i32, i32) {
    %c0_i32 = arith.constant 0 : i32
    %c0_i32_0 = arith.constant 0 : i32
    %c0_i32_1 = arith.constant 0 : i32
    return %c0_i32, %c0_i32_0 : i32, i32
  }
  func.func @transform_10(%arg0: i32, %arg1: i32) -> (i32, i32, i32) {
    %c0_i32 = arith.constant 0 : i32
    %c0_i32_0 = arith.constant 0 : i32
    %c0_i32_1 = arith.constant 0 : i32
    %c0_i32_2 = arith.constant 0 : i32
    return %c0_i32, %c0_i32_0, %c0_i32_1 : i32, i32, i32
  }
  func.func @transform_11(%arg0: i32, %arg1: i32) -> (i32, i32) {
    %c0_i32 = arith.constant 0 : i32
    %c0_i32_0 = arith.constant 0 : i32
    %c0_i32_1 = arith.constant 0 : i32
    return %c0_i32, %c0_i32_0 : i32, i32
  }
  func.func @transform_12(%arg0: i32, %arg1: i32) -> (i32, i32) {
    %c0_i32 = arith.constant 0 : i32
    %c0_i32_0 = arith.constant 0 : i32
    %c0_i32_1 = arith.constant 0 : i32
    return %c0_i32, %c0_i32_0 : i32, i32
  }
  func.func @transform_13(%arg0: i32, %arg1: i32) -> (i32, i32) {
    %c0_i32 = arith.constant 0 : i32
    %c0_i32_0 = arith.constant 0 : i32
    %c0_i32_1 = arith.constant 0 : i32
    return %c0_i32, %c0_i32_0 : i32, i32
  }
  func.func @transform_14(%arg0: i32, %arg1: i32) -> (i32, i32) {
    %c0_i32 = arith.constant 0 : i32
    %c0_i32_0 = arith.constant 0 : i32
    %c0_i32_1 = arith.constant 0 : i32
    return %c0_i32, %c0_i32_0 : i32, i32
  }
  func.func @transform_15(%arg0: i32, %arg1: i32) -> (i32, i32) {
    %c0_i32 = arith.constant 0 : i32
    %c0_i32_0 = arith.constant 0 : i32
    %c0_i32_1 = arith.constant 0 : i32
    return %c0_i32, %c0_i32_0 : i32, i32
  }
  func.func @transform_16(%arg0: i32, %arg1: i32) -> (i32, i32, i32) {
    %c0_i32 = arith.constant 0 : i32
    %c0_i32_0 = arith.constant 0 : i32
    %c0_i32_1 = arith.constant 0 : i32
    %c0_i32_2 = arith.constant 0 : i32
    return %c0_i32, %c0_i32_0, %c0_i32_1 : i32, i32, i32
  }
  func.func @transform_17(%arg0: i32, %arg1: i32) -> (i32, i32) {
    %c0_i32 = arith.constant 0 : i32
    %c0_i32_0 = arith.constant 0 : i32
    %c0_i32_1 = arith.constant 0 : i32
    return %c0_i32, %c0_i32_0 : i32, i32
  }
  func.func @transform_18(%arg0: i32, %arg1: i32) -> (i32, i32) {
    %c0_i32 = arith.constant 0 : i32
    %c0_i32_0 = arith.constant 0 : i32
    %c0_i32_1 = arith.constant 0 : i32
    return %c0_i32, %c0_i32_0 : i32, i32
  }
  func.func @transform_19(%arg0: i32, %arg1: i32) -> (i32, i32) {
    %c0_i32 = arith.constant 0 : i32
    %c0_i32_0 = arith.constant 0 : i32
    %c0_i32_1 = arith.constant 0 : i32
    return %c0_i32, %c0_i32_0 : i32, i32
  }
  func.func @transform_20(%arg0: i32, %arg1: i32) -> (i32, i32, i32) {
    %c0_i32 = arith.constant 0 : i32
    %c0_i32_0 = arith.constant 0 : i32
    %c0_i32_1 = arith.constant 0 : i32
    %c0_i32_2 = arith.constant 0 : i32
    return %c0_i32, %c0_i32_0, %c0_i32_1 : i32, i32, i32
  }
  func.func @transform_21(%arg0: i32, %arg1: i32) -> (i32, i32) {
    %c0_i32 = arith.constant 0 : i32
    %c0_i32_0 = arith.constant 0 : i32
    %c0_i32_1 = arith.constant 0 : i32
    return %c0_i32, %c0_i32_0 : i32, i32
  }
  func.func @transform_22(%arg0: i32, %arg1: i32) -> (i32, i32) {
    %c0_i32 = arith.constant 0 : i32
    %c0_i32_0 = arith.constant 0 : i32
    %c0_i32_1 = arith.constant 0 : i32
    return %c0_i32, %c0_i32_0 : i32, i32
  }
  func.func @transform_23(%arg0: i32, %arg1: i32) -> (i32, i32) {
    %c0_i32 = arith.constant 0 : i32
    %c0_i32_0 = arith.constant 0 : i32
    %c0_i32_1 = arith.constant 0 : i32
    return %c0_i32, %c0_i32_0 : i32, i32
  }
  func.func @transform_24(%arg0: i32, %arg1: i32) -> (i32, i32) {
    %c0_i32 = arith.constant 0 : i32
    %c0_i32_0 = arith.constant 0 : i32
    %c0_i32_1 = arith.constant 0 : i32
    return %c0_i32, %c0_i32_0 : i32, i32
  }
  func.func @transform_25(%arg0: i32, %arg1: i32) -> (i32, i32) {
    %c0_i32 = arith.constant 0 : i32
    %c0_i32_0 = arith.constant 0 : i32
    %c0_i32_1 = arith.constant 0 : i32
    return %c0_i32, %c0_i32_0 : i32, i32
  }
  func.func @transform_26(%arg0: i32, %arg1: i32) -> (i32, i32, i32) {
    %c0_i32 = arith.constant 0 : i32
    %c0_i32_0 = arith.constant 0 : i32
    %c0_i32_1 = arith.constant 0 : i32
    %c0_i32_2 = arith.constant 0 : i32
    return %c0_i32, %c0_i32_0, %c0_i32_1 : i32, i32, i32
  }
  func.func @transform_27(%arg0: i32, %arg1: i32) -> (i32, i32) {
    %c0_i32 = arith.constant 0 : i32
    %c0_i32_0 = arith.constant 0 : i32
    %c0_i32_1 = arith.constant 0 : i32
    return %c0_i32, %c0_i32_0 : i32, i32
  }
  func.func @transform_28(%arg0: i32, %arg1: i32) -> (i32, i32) {
    %c0_i32 = arith.constant 0 : i32
    %c0_i32_0 = arith.constant 0 : i32
    %c0_i32_1 = arith.constant 0 : i32
    return %c0_i32, %c0_i32_0 : i32, i32
  }
  func.func @transform_29(%arg0: i32, %arg1: i32) -> (i32, i32) {
    %c0_i32 = arith.constant 0 : i32
    %c0_i32_0 = arith.constant 0 : i32
    %c0_i32_1 = arith.constant 0 : i32
    return %c0_i32, %c0_i32_0 : i32, i32
  }
  func.func @transform_30(%arg0: i32, %arg1: i32) -> (i32, i32, i32) {
    %c0_i32 = arith.constant 0 : i32
    %c0_i32_0 = arith.constant 0 : i32
    %c0_i32_1 = arith.constant 0 : i32
    %c0_i32_2 = arith.constant 0 : i32
    return %c0_i32, %c0_i32_0, %c0_i32_1 : i32, i32, i32
  }
  func.func @transform_31(%arg0: i32, %arg1: i32) -> (i32, i32) {
    %c0_i32 = arith.constant 0 : i32
    %c0_i32_0 = arith.constant 0 : i32
    %c0_i32_1 = arith.constant 0 : i32
    return %c0_i32, %c0_i32_0 : i32, i32
  }
  func.func @transform_32(%arg0: i32, %arg1: i32) -> (i32, i32) {
    %c0_i32 = arith.constant 0 : i32
    %c0_i32_0 = arith.constant 0 : i32
    %c0_i32_1 = arith.constant 0 : i32
    return %c0_i32, %c0_i32_0 : i32, i32
  }
  func.func @transform_33(%arg0: i32, %arg1: i32) -> (i32, i32) {
    %c0_i32 = arith.constant 0 : i32
    %c0_i32_0 = arith.constant 0 : i32
    %c0_i32_1 = arith.constant 0 : i32
    return %c0_i32, %c0_i32_0 : i32, i32
  }
  func.func @transform_34(%arg0: i32, %arg1: i32) -> (i32, i32) {
    %c0_i32 = arith.constant 0 : i32
    %c0_i32_0 = arith.constant 0 : i32
    %c0_i32_1 = arith.constant 0 : i32
    return %c0_i32, %c0_i32_0 : i32, i32
  }
  func.func @transform_35(%arg0: i32, %arg1: i32) -> (i32, i32) {
    %c0_i32 = arith.constant 0 : i32
    %c0_i32_0 = arith.constant 0 : i32
    %c0_i32_1 = arith.constant 0 : i32
    return %c0_i32, %c0_i32_0 : i32, i32
  }
  func.func @transform_36(%arg0: i32, %arg1: i32) -> (i32, i32) {
    %c0_i32 = arith.constant 0 : i32
    %c0_i32_0 = arith.constant 0 : i32
    %c0_i32_1 = arith.constant 0 : i32
    return %c0_i32, %c0_i32_0 : i32, i32
  }
  func.func @transform_37(%arg0: i32, %arg1: i32) -> (i32, i32) {
    %c0_i32 = arith.constant 0 : i32
    %c0_i32_0 = arith.constant 0 : i32
    %c0_i32_1 = arith.constant 0 : i32
    return %c0_i32, %c0_i32_0 : i32, i32
  }
  func.func @transform_38(%arg0: i32, %arg1: i32) -> (i32, i32) {
    %c0_i32 = arith.constant 0 : i32
    %c0_i32_0 = arith.constant 0 : i32
    %c0_i32_1 = arith.constant 0 : i32
    return %c0_i32, %c0_i32_0 : i32, i32
  }
  func.func @transform_39(%arg0: i32, %arg1: i32) -> (i32, i32) {
    %c0_i32 = arith.constant 0 : i32
    %c0_i32_0 = arith.constant 0 : i32
    %c0_i32_1 = arith.constant 0 : i32
    return %c0_i32, %c0_i32_0 : i32, i32
  }
  func.func @transform_40(%arg0: i32, %arg1: i32) -> (i32, i32, i32) {
    %c0_i32 = arith.constant 0 : i32
    %c0_i32_0 = arith.constant 0 : i32
    %c0_i32_1 = arith.constant 0 : i32
    return %arg0, %c0_i32, %c0_i32_0 : i32, i32, i32
  }
  func.func @transform_41(%arg0: i32, %arg1: i32) -> (i32, i32, i32) {
    %c0_i32 = arith.constant 0 : i32
    %c0_i32_0 = arith.constant 0 : i32
    %c0_i32_1 = arith.constant 0 : i32
    return %arg0, %c0_i32, %c0_i32_0 : i32, i32, i32
  }
  func.func @transform_42(%arg0: i32, %arg1: i32) -> (i32, i32, i32) {
    %c0_i32 = arith.constant 0 : i32
    %c0_i32_0 = arith.constant 0 : i32
    %c0_i32_1 = arith.constant 0 : i32
    return %arg0, %c0_i32, %c0_i32_0 : i32, i32, i32
  }
  func.func @transform_43(%arg0: i32, %arg1: i32) -> (i32, i32, i32) {
    %c0_i32 = arith.constant 0 : i32
    %c0_i32_0 = arith.constant 0 : i32
    return %arg0, %arg1, %c0_i32 : i32, i32, i32
  }
}

</mosaic_0001>

<bundles_post_ra>
// kernel: tpu_custom_call.1
= control target key start
LH: loop header
LB: loop body
LE: loop exit
PB: predicated region body
PF: predicated region fallthrough
CT: control target
= control target key end

     0   :  { %s3965_s6 = smov 1   ;;  %s3966_s10 = smov 2   ;;  %s4764_s0 = inlined_call_operand.smem [shape: u32[44], index: -1, kind: input, shape index: {}] }
   0x1   :  { %s4028_s5 = sld [smem:[%s4764_s0]]   ;;  %s3967_s14 = smov 3  }
   0x2   :  { %s4033_s9 = sld [smem:[%s4764_s0 + %s3965_s6]]   ;;  %s3968_s18 = smov 4  }
   0x3   :  { %s4038_s13 = sld [smem:[%s4764_s0 + %s3966_s10]]   ;;  %s3969_s22 = smov 5  }
   0x4   :  { %s4043_s17 = sld [smem:[%s4764_s0 + %s3967_s14]]   ;;  %s3970_s26 = smov 6  }
   0x5   :  { %s4048_s21 = sld [smem:[%s4764_s0 + %s3968_s18]]   ;;  %s3971_s30 = smov 7  }
   0x6   :  { %s4053_s25 = sld [smem:[%s4764_s0 + %s3969_s22]]   ;;  %s3972_s4 = smov 8  }
   0x7   :  { %4790 = sst [smem:[#allocation30_spill]] %s4028_s5  ;;  %s3973_s10 = smov 9  }
   0x8   :  { %s4058_s29 = sld [smem:[%s4764_s0 + %s3970_s26]]   ;;  %s3974_s15 = smov 10  }
   0x9   :  { %s4063_s3 = sld [smem:[%s4764_s0 + %s3971_s30]]   ;;  %s3975_s20 = smov 11  }
   0xa   :  { %s4068_s8 = sld [smem:[%s4764_s0 + %s3972_s4]]   ;;  %s3976_s26 = smov 12  }
   0xb   :  { %s4073_s14 = sld [smem:[%s4764_s0 + %s3973_s10]]   ;;  %s3977_s1 = smov 13  }
   0xc   :  { %4791 = sst [smem:[#allocation31_spill]] %s4053_s25  ;;  %s3978_s7 = smov 14  }
   0xd   :  { %s4078_s19 = sld [smem:[%s4764_s0 + %s3974_s15]]   ;;  %s3979_s15 = smov 15  }
   0xe   :  { %4792 = sst [smem:[#allocation32_spill]] %s4058_s29  ;;  %s3980_s22 = smov 16  }
   0xf   :  { %4793 = sst [smem:[#allocation33_spill]] %s4063_s3  ;;  %s3981_s28 = smov 17  }
  0x10   :  { %4794 = sst [smem:[#allocation34_spill]] %s4068_s8  ;;  %s3982_s10 = smov 18  }
  0x11   :  { %4795 = sst [smem:[#allocation35_spill]] %s4073_s14  ;;  %s3983_s16 = smov 19  }
  0x12   :  { %s4083_s24 = sld [smem:[%s4764_s0 + %s3975_s20]]   ;;  %s3988_s23 = smov 24  }
  0x13   :  { %4796 = sst [smem:[#allocation36_spill]] %s4078_s19 }
  0x14   :  { %s4088_s30 = sld [smem:[%s4764_s0 + %s3976_s26]]  }
  0x15   :  { %s4093_s6 = sld [smem:[%s4764_s0 + %s3977_s1]]  }
  0x16   :  { %s4098_s12 = sld [smem:[%s4764_s0 + %s3978_s7]]  }
  0x17   :  { %s3024_s20 = sld [smem:[%s4764_s0 + %s3979_s15]]  }
  0x18   :  { %4797 = sst [smem:[#allocation37_spill]] %s4083_s24 }
  0x19   :  { %s4106_s27 = sld [smem:[%s4764_s0 + %s3980_s22]]   ;;  %s3984_s22 = smov 20  }
  0x1a   :  { %4798 = sst [smem:[#allocation38_spill]] %s4088_s30 }
  0x1b   :  { %4799 = sst [smem:[#allocation39_spill]] %s4093_s6 }
  0x1c   :  { %4800 = sst [smem:[#allocation40_spill]] %s4098_s12 }
  0x1d   :  { %s4111_s4 = sld [smem:[%s4764_s0 + %s3981_s28]]   ;;  %s3985_s28 = smov 21   ;;  %v93_v0 = vstv %s3024_s20 }
  0x1e   :  { %s4116_s12 = sld [smem:[%s4764_s0 + %s3982_s10]]   ;;  %s3986_s10 = smov 22   ;;  %94 = vst [vmem:[#allocation3] sm:$0x1] %v93_v0 }
  0x1f   :  { %4801 = sst [smem:[#allocation41_spill]] %s4106_s27  ;;  %s3989_s20 = smov 26  }
  0x20   :  { %s4121_s6 = sld [smem:[%s4764_s0 + %s3983_s16]]   ;;  %s3987_s16 = smov 23  }
  0x21   :  { %s4126_s30 = sld [smem:[%s4764_s0 + %s3984_s22]]  }
  0x22   :  { %s4136_s15 = sld [smem:[%s4764_s0 + %s3986_s10]]   ;;  %s3990_s10 = smov 27  }
  0x23   :  { %4802 = sst [smem:[#allocation42_spill]] %s4111_s4 }
  0x24   :  { %4803 = sst [smem:[#allocation43_spill]] %s4116_s12  ;;  %s3992_s12 = smov 29  }
  0x25   :  { %s4131_s4 = sld [smem:[%s4764_s0 + %s3985_s28]]  }
  0x26   :  { %4804 = sst [smem:[#allocation44_spill]] %s4121_s6  ;;  %s3991_s6 = smov 28  }
  0x27   :  { %s4141_s22 = sld [smem:[%s4764_s0 + %s3987_s16]]   ;;  %s4007_s16 = smov 35  }
  0x28   :  { %4806 = sst [smem:[#allocation46_spill]] %s4136_s15  ;;  %s3994_s15 = smov 31  }
  0x29   :  { %s4146_s28 = sld [smem:[%s4764_s0 + %s3988_s23]]  }
  0x2a   :  { %s4151_s7 = sld [smem:[%s4764_s0 + %s3989_s20]]   ;;  %s3993_s20 = smov 30  }
  0x2b   :  { %4805 = sst [smem:[#allocation45_spill]] %s4131_s4 }
  0x2c   :  { %s4156_s4 = sld [smem:[%s4764_s0 + %s3990_s10]]  }
  0x2d   :  { %4807 = sst [smem:[#allocation47_spill]] %s4141_s22 }
  0x2e   :  { %s4161_s22 = sld [smem:[%s4764_s0 + %s3991_s6]]   ;;  %s3995_s6 = smov 32  }
  0x2f   :  { %4808 = sst [smem:[#allocation48_spill]] %s4146_s28 }
  0x30   :  { %4809 = sst [smem:[#allocation49_spill]] %s4151_s7 }
  0x31   :  { %s4166_s28 = sld [smem:[%s4764_s0 + %s3992_s12]]   ;;  %s3996_s12 = smov 33  }
  0x32   :  { %4810 = sst [smem:[#allocation50_spill]] %s4156_s4 }
  0x33   :  { %s4171_s24 = sld [smem:[%s4764_s0 + %s3993_s20]]   ;;  %s3997_s20 = smov 34  }
  0x34   :  { %4811 = sst [smem:[#allocation51_spill]] %s4161_s22 }
  0x35   :  { %s4176_s4 = sld [smem:[%s4764_s0 + %s3994_s15]]   ;;  %s3998_s15 = smov 36  }
  0x36   :  { %s4181_s22 = sld [smem:[%s4764_s0 + %s3995_s6]]   ;;  %s3999_s6 = smov 37  }
  0x37   :  { %4812 = sst [smem:[#allocation52_spill]] %s4166_s28 }
  0x38   :  { %s4186_s28 = sld [smem:[%s4764_s0 + %s3996_s12]]   ;;  %s4000_s12 = smov 38  }
  0x39   :  { %4813 = sst [smem:[#allocation53_spill]] %s4171_s24 }
  0x3a   :  { %s4191_s14 = sld [smem:[%s4764_s0 + %s3997_s20]]   ;;  %s4001_s20 = smov 39  }
  0x3b   :  { %4814 = sst [smem:[#allocation54_spill]] %s4176_s4 }
  0x3c   :  { %4815 = sst [smem:[#allocation55_spill]] %s4181_s22 }
  0x3d   :  { %s4196_s4 = sld [smem:[%s4764_s0 + %s3998_s15]]   ;;  %s4002_s15 = smov 40  }
  0x3e   :  { %4816 = sst [smem:[#allocation56_spill]] %s4186_s28 }
  0x3f   :  { %s4201_s22 = sld [smem:[%s4764_s0 + %s3999_s6]]   ;;  %s4003_s6 = smov 41  }
  0x40   :  { %4817 = sst [smem:[#allocation57_spill]] %s4191_s14 }
  0x41   :  { %s4206_s28 = sld [smem:[%s4764_s0 + %s4000_s12]]   ;;  %s4004_s12 = smov 42  }
  0x42   :  { %s4211_s14 = sld [smem:[%s4764_s0 + %s4001_s20]]   ;;  %s4005_s20 = smov 43  }
  0x43   :  { %4818 = sst [smem:[#allocation58_spill]] %s4196_s4 }
  0x44   :  { %s4216_s4 = sld [smem:[%s4764_s0 + %s4002_s15]]   ;;  %s4006_s15 = smov 25  }
  0x45   :  { %4819 = sst [smem:[#allocation59_spill]] %s4201_s22 }
  0x46   :  { %s4221_s22 = sld [smem:[%s4764_s0 + %s4003_s6]]  }
  0x47   :  { %4820 = sst [smem:[#allocation60_spill]] %s4206_s28 }
  0x48   :  { %4821 = sst [smem:[#allocation61_spill]] %s4211_s14 }
  0x49   :  { %s4226_s28 = sld [smem:[%s4764_s0 + %s4004_s12]]  }
  0x4a   :  { %4822 = sst [smem:[#allocation62_spill]] %s4216_s4 }
  0x4b   :  { %s4231_s14 = sld [smem:[%s4764_s0 + %s4005_s20]]  }
  0x4c   :  { %4823 = sst [smem:[#allocation63_spill]] %s4221_s22 }
  0x4d   :  { %s3034_s4 = sld [smem:[%s4764_s0 + %s4006_s15]]  }
  0x4e   :  { %s3044_s22 = sld [smem:[%s4764_s0 + %s4007_s16]]  }
  0x4f   :  { %4824 = sst [smem:[#allocation64_spill]] %s4226_s28 }
  0x51   :  { %4825 = sst [smem:[#allocation65_spill]] %s4231_s14 }
  0x53   :  { %v95_v1 = vstv %s3034_s4 }
  0x54   :  { %96 = vst [vmem:[#allocation4] sm:$0x1] %v95_v1  ;;  %v97_v2 = vstv %s3044_s22 }
  0x55   :  { %98 = vst [vmem:[#allocation5] sm:$0x1] %v97_v2 }
  0x56   :  { %99 = vsyncpa [#allocation7], 0 }
  0x57   :  { %100 = vsyncpa [#allocation10], 0 }
  0x58   :  { %101 = vsyncpa [#allocation13], 0 }
  0x59   :  { %102 = vsyncpa [#allocation16], 0 }
  0x5a   :  { %103 = vsyncpa [#allocation8], 0 }
  0x5b   :  { %105 = vsyncpa [#allocation8 + $0x1], 0 }
  0x5c   :  { %106 = vsyncpa [#allocation19], 0 }
  0x5d   :  { %108 = vsyncpa [#allocation19 + $0x1], 0 }
  0x5e   :  { %109 = vsyncpa [#allocation22], 0 }
  0x5f   :  { %111 = vsyncpa [#allocation22 + $0x1], 0  ;;  %s4239_s12 = smov 0   ;;  %s4241_s23 = smov 0  }
  0x60   :  { %s4243_s26 = smov 0   ;;  %s4245_s0 = smov 0  }
  0x61   :  { %s4247_s4 = smov 0   ;;  %s4249_s22 = smov 0  }
  0x62   :  { %s4251_s20 = smov 0   ;;  %s4253_s1 = smov 0  }
  0x63   :  { %s4255_s2 = smov 0   ;;  %s4257_s15 = smov 0  }
  0x64   :  { %s4259_s10 = smov 0  }
  0x65 LB: > { %s4826_s29 = sld [smem:[#allocation32_spill]]  ;;  %s4295_s11 = sadd.s32 4294967295, %s3963_s10   ;;  %s3939_s4 = sphi %s4247_s4, %s4923_s4   ;;  %s3935_s0 = sphi %s4245_s0, %s4922_s0   ;;  %s3931_s26 = sphi %s4243_s26, %s4913_s26   ;;  %s3927_s23 = sphi %s4241_s23, %s4921_s23   ;;  %s3923_s12 = sphi %s4239_s12, %s4920_s12   ;;  %s3963_s10 = sphi %s4259_s10, %s117_s10   ;;  %s3959_s15 = sphi %s4257_s15, %s4919_s15   ;;  %s3955_s2 = sphi %s4255_s2, %s4918_s2   ;;  %s3951_s1 = sphi %s4253_s1, %s4917_s1   ;;  %s3947_s20 = sphi %s4251_s20, %s4916_s20   ;;  %s3943_s22 = sphi %s4249_s22, %s4924_s22  }
  0x66   : > { %s4827_s27 = sld [smem:[#allocation41_spill]]  ;;  %s126_s6 = sadd.s32 1, %s3955_s2 }
  0x67   : > { %s4828_s24 = sld [smem:[#allocation53_spill]]  ;;  %s129_s18 = sadd.s32 1, %s3959_s15 }
  0x68   : > { %s4829_s7 = sld [smem:[#allocation49_spill]]  ;;  %p127_p0 = scmp.ge.s32.totalorder %s126_s6, 3 }
  0x69   : > { %s4830_s19 = sld [smem:[#allocation36_spill]]  ;;  %s1006_s14 = sadd.s32 1, %s3943_s22 }
  0x6a   : > { %4831 = sst [smem:[#allocation66_spill]] %s3931_s26  ;;  %p1016_p1 = scmp.ne.s32.totalorder %s3943_s22, %s3939_s4 }
  0x6b   : > { %4832 = sst [smem:[#allocation67_spill]] %s3935_s0  ;;  %p1017_p2 = scmp.eq.s32.totalorder %s4295_s11, 5 }
  0x6c   : > { %4833 = sst [smem:[#allocation68_spill]] %s3943_s22  ;;  %s4926_s6 = smov (%p127_p0, %s126_s6), 0 }
  0x6d   : > { %4834 = sst [smem:[#allocation69_spill]] %s3947_s20  ;;  %s4928_s18 = smov (!%p127_p0, %s129_s18), %s3959_s15 }
  0x6e   : > { %4835 = sst [smem:[#allocation70_spill]] %s3955_s2  ;;  %p4309_p3 = por %p1017_p2, %p1016_p1 }
  0x6f   : > { %4836 = sst [smem:[#allocation71_spill]] %s3959_s15  ;;  %p1022_p4 = scmp.ne.s32.totalorder %s3939_s4, %s3935_s0 }
  0x70   : > { %4837 = sst [smem:[#allocation72_spill]] %s4926_s6  ;;  %p131_p5 = scmp.ge.s32.totalorder %s4928_s18, 2 }
  0x71   : > { %s4838_s16 = scalar_select %p4309_p3, 1, 0 }
  0x72   : > { %s4840_s28 = sadd.s32 4294967294, %s3963_s10   ;;  %s1082_s3 = ssub.s32 %s3955_s2, %s4926_s6 }
  0x73   : > { %4839 = sst [smem:[#allocation73_spill]] %s4838_s16  ;;  %p4317_p6 = scmp.eq.s32.totalorder %s4840_s28, 5 }
  0x74   : > { %s1086_s20 = sadd.s32 1, %s3931_s26  ;;  %s4930_s18 = smov (%p131_p5, %s4928_s18), 0 }
  0x75   : > { %4842 = sst [smem:[#allocation74_spill]] %s4930_s18  ;;  %p4328_p7 = por %p4317_p6, %p1022_p4 }
  0x76   : > { %p1096_p8 = scmp.ne.s32.totalorder %s3931_s26, %s3927_s23  ;;  %s1003_s28 = ssub.s32 %s3959_s15, %s4930_s18 }
  0x77   : > { %s4843_s0 = scalar_select %p4328_p7, 1, 0 }
  0x78   : > { %p1102_p9 = scmp.ne.s32.totalorder %s3927_s23, %s3923_s12  ;;  %p1004_p10 = scmp.eq.s32.totalorder %s1003_s28, 0 }
  0x79   : > { %4844 = sst [smem:[#allocation75_spill]] %s4843_s0  ;;  %s1083_s16 = sor.u32 %s1082_s3, %s1003_s28 }
  0x7a   : > { %p1084_p11 = scmp.eq.s32.totalorder %s1083_s16, 0  ;;  %p4340_p12 = por %p1096_p8, %p1017_p2 }
  0x7b   : > { %s4345_s2 = scalar_select %p1004_p10, %s3943_s22, %s1006_s14  }
  0x7c   : > { %s4348_s25 = scalar_select %p1084_p11, %s3931_s26, %s1086_s20  }
  0x7d   : > { %4846 = sst [smem:[#allocation76_spill]] %s4345_s2  ;;  %p4352_p13 = por %p1102_p9, %p4317_p6 }
  0x7e   : > { %4847 = sst [smem:[#allocation77_spill]] %s4348_s25  ;;  %p3055_p0 = scmp.ge.s32.totalorder %s3963_s10, 1 }
  0x7f   : > { %s4848_s0 = scalar_select %p4352_p13, 1, 0 }
  0x80   : > { %p1110_p1 = scmp.lt.s32.totalorder %s3963_s10, 7  ;;  %p4779_p4 = scmp.eq.s32.totalorder %s4295_s11, 0 }
  0x81   : > { %4849 = sst [smem:[#allocation78_spill]] %s4848_s0  ;;  %s1144_s16 = sshll.u32 %s4830_s19, 4  ;;  %s1145_s16 = int_to_ptr.hbm [resolvable:$true] %s1144_s16 }
  0x82   : > { %p4359_p5 = pnand %p3055_p0, %p1110_p1  ;;  %s4008_s14 = smov [#allocation9]  }
  0x83   : > { %s1146_s8 = sshll.u32 %s4008_s14, 4  ;;  %s1196_s20 = sshll.u32 %s4126_s30, 4  ;;  %s1147_s8 = int_to_ptr.vmem [resolvable:$true] %s1146_s8  ;;  %s4373_s20 = int_to_ptr.hbm [resolvable:$true] %s1196_s20 }
  0x84   : > { %p3330_p2 = pneg %p4359_p5  ;;  %s4009_s18 = smov [#allocation12]  }
  0x85   : > { %s4375_s15 = sshll.u32 %s4009_s18, 4  ;;  %s3557_s2 = sshra.s32 %s1145_s16, 4  ;;  %s3558_s2 = int_to_ptr.hbm [resolvable:$true] %s3557_s2  ;;  %s1199_s15 = int_to_ptr.vmem [resolvable:$true] %s4375_s15 }
  0x86   : > { %p4369_p6 = pnand %p4779_p4, %p3330_p2  ;;  %s3559_s22 = scalar_lea.hbm %s3558_s2, 48 }
  0x87   : > { %p3560_p8 = scmp.ne.s32.totalorder %s3558_s2, %s3559_s22  ;;  %s3564_s25 = scalar_lea.hbm %s4830_s19, 48 }
  0x88   : > { %p4379_p9 = pneg %p4369_p6  ;;  %p3565_p0 = scmp.lt.s32.totalorder %s3558_s2, %s4830_s19 }
  0x89   : > { %p3566_p1 = scmp.lt.s32.totalorder %s3564_s25, %s3559_s22 }
  0x8a   : > { %p3562_p10 = pnand %p4379_p9, %p3560_p8 }
  0x8b   : > { %p3567_p2 = por %p3566_p1, %p3565_p0 }
  0x8c   : > { %p3563_p11 = pneg %p3562_p10 }
  0x8e   : > { %p3568_p4 = pnand %p3567_p2, %p3563_p11 }
  0x90   : > { %3571 = shalt.err (!%p3568_p4)
}
  0x91   : > { %s4010_s18 = smov 64   ;;  %s4011_s26 = smov 4  }
  0x92   : > { %3336 = dma.hbm_to_vmem [thread:$0]  (!%p4369_p6), %s1145_s16, 768, %s1147_s8, [#allocation10], %s4010_s18, %s4010_s18, %s4011_s26  }
  0x93   : > { %s3587_s0 = sshra.s32 %s4373_s20, 4  ;;  %s3594_s22 = scalar_lea.hbm %s4126_s30, 48  ;;  %s3588_s0 = int_to_ptr.hbm [resolvable:$true] %s3587_s0 }
  0x94   : > { %s3589_s25 = scalar_lea.hbm %s3588_s0, 48  ;;  %p3595_p11 = scmp.lt.s32.totalorder %s3588_s0, %s4126_s30 }
  0x95   : > { %p3590_p8 = scmp.ne.s32.totalorder %s3588_s0, %s3589_s25  ;;  %p3596_p0 = scmp.lt.s32.totalorder %s3594_s22, %s3589_s25 }
  0x97   : > { %p3592_p4 = pnand %p3590_p8, %p4379_p9  ;;  %p3597_p1 = por %p3596_p0, %p3595_p11 }
  0x99   : > { %p3593_p10 = pneg %p3592_p4 }
  0x9b   : > { %p3598_p2 = pnand %p3597_p1, %p3593_p10 }
  0x9d   : > { %3601 = shalt.err (!%p3598_p2)
}
  0x9e   : > { %3342 = dma.hbm_to_vmem [thread:$0]  (!%p4369_p6), %s4373_s20, 768, %s1199_s15, [#allocation13], %s4010_s18, %s4010_s18, %s4011_s26  }
  0x9f   : > { %s1121_s2 = sshll.u32 %s4826_s29, 4  ;;  %s4012_s16 = smov [#allocation6]   ;;  %s1122_s2 = int_to_ptr.hbm [resolvable:$true] %s1121_s2 }
  0xa0   : > { %s1123_s0 = sshll.u32 %s4012_s16, 4  ;;  %s1173_s8 = sshll.u32 %s4827_s27, 4  ;;  %s1124_s0 = int_to_ptr.vmem [resolvable:$true] %s1123_s0  ;;  %s4406_s8 = int_to_ptr.hbm [resolvable:$true] %s1173_s8 }
  0xa1   : > { %s3617_s25 = sshra.s32 %s1122_s2, 4  ;;  %s3624_s19 = scalar_lea.hbm %s4826_s29, 48  ;;  %s3618_s25 = int_to_ptr.hbm [resolvable:$true] %s3617_s25 }
  0xa2   : > { %s3619_s22 = scalar_lea.hbm %s3618_s25, 48  ;;  %p3625_p11 = scmp.lt.s32.totalorder %s3618_s25, %s4826_s29 }
  0xa3   : > { %p3620_p8 = scmp.ne.s32.totalorder %s3618_s25, %s3619_s22  ;;  %p3626_p0 = scmp.lt.s32.totalorder %s3624_s19, %s3619_s22 }
  0xa5   : > { %p3622_p4 = pnand %p3620_p8, %p4379_p9  ;;  %p3627_p1 = por %p3626_p0, %p3625_p11 }
  0xa7   : > { %p3623_p10 = pneg %p3622_p4 }
  0xa9   : > { %p3628_p2 = pnand %p3627_p1, %p3623_p10 }
  0xab   : > { %3631 = shalt.err (!%p3628_p2)
}
  0xac   : > { %3333 = dma.hbm_to_vmem [thread:$0]  (!%p4369_p6), %s1122_s2, 768, %s1124_s0, [#allocation7], %s4010_s18, %s4010_s18, %s4011_s26  }
  0xad   : > { %s1225_s15 = sshll.u32 %s4829_s7, 4  ;;  %s4013_s20 = smov [#allocation11]   ;;  %s4418_s15 = int_to_ptr.hbm [resolvable:$true] %s1225_s15 }
  0xae   : > { %s1175_s16 = sshll.u32 %s4013_s20, 4  ;;  %s3647_s19 = sshra.s32 %s4406_s8, 4  ;;  %s1176_s16 = int_to_ptr.vmem [resolvable:$true] %s1175_s16  ;;  %s3648_s19 = int_to_ptr.hbm [resolvable:$true] %s3647_s19 }
  0xaf   : > { %s3649_s25 = scalar_lea.hbm %s3648_s19, 48  ;;  %s3654_s22 = scalar_lea.hbm %s4827_s27, 48 }
  0xb0   : > { %p3650_p8 = scmp.ne.s32.totalorder %s3648_s19, %s3649_s25  ;;  %p3655_p11 = scmp.lt.s32.totalorder %s3648_s19, %s4827_s27 }
  0xb1   : > { %p3656_p0 = scmp.lt.s32.totalorder %s3654_s22, %s3649_s25 }
  0xb2   : > { %p3652_p4 = pnand %p3650_p8, %p4379_p9 }
  0xb3   : > { %p3657_p1 = por %p3656_p0, %p3655_p11 }
  0xb4   : > { %p3653_p10 = pneg %p3652_p4 }
  0xb6   : > { %p3658_p2 = pnand %p3657_p1, %p3653_p10 }
  0xb8   : > { %3661 = shalt.err (!%p3658_p2)
}
  0xb9   : > { %3339 = dma.hbm_to_vmem [thread:$0]  (!%p4369_p6), %s4406_s8, 768, %s1176_s16, [#allocation10], %s4010_s18, %s4010_s18, %s4011_s26  }
  0xba   : > { %s4014_s2 = smov [#allocation14]   ;;  %s1248_s20 = sshll.u32 %s4828_s24, 4  ;;  %s1249_s20 = int_to_ptr.hbm [resolvable:$true] %s1248_s20 }
  0xbb   : > { %s1227_s0 = sshll.u32 %s4014_s2, 4  ;;  %s3677_s19 = sshra.s32 %s4418_s15, 4  ;;  %s1228_s0 = int_to_ptr.vmem [resolvable:$true] %s1227_s0  ;;  %s3678_s19 = int_to_ptr.hbm [resolvable:$true] %s3677_s19 }
  0xbc   : > { %s3679_s25 = scalar_lea.hbm %s3678_s19, 48  ;;  %s3684_s22 = scalar_lea.hbm %s4829_s7, 48 }
  0xbd   : > { %p3680_p8 = scmp.ne.s32.totalorder %s3678_s19, %s3679_s25  ;;  %p3685_p11 = scmp.lt.s32.totalorder %s3678_s19, %s4829_s7 }
  0xbe   : > { %p3686_p0 = scmp.lt.s32.totalorder %s3684_s22, %s3679_s25 }
  0xbf   : > { %p3682_p4 = pnand %p3680_p8, %p4379_p9 }
  0xc0   : > { %p3687_p1 = por %p3686_p0, %p3685_p11 }
  0xc1   : > { %p3683_p10 = pneg %p3682_p4 }
  0xc3   : > { %p3688_p2 = pnand %p3687_p1, %p3683_p10 }
  0xc5   : > { %3691 = shalt.err (!%p3688_p2)
}
  0xc6   : > { %3345 = dma.hbm_to_vmem [thread:$0]  (!%p4369_p6), %s4418_s15, 768, %s1228_s0, [#allocation13], %s4010_s18, %s4010_s18, %s4011_s26  }
  0xc7   : > { %s4015_s8 = smov [#allocation15]   ;;  %s3707_s2 = sshra.s32 %s1249_s20, 4  ;;  %s3708_s2 = int_to_ptr.hbm [resolvable:$true] %s3707_s2 }
  0xc8   : > { %s1250_s16 = sshll.u32 %s4015_s8, 4  ;;  %s3709_s19 = scalar_lea.hbm %s3708_s2, 48  ;;  %s1251_s16 = int_to_ptr.vmem [resolvable:$true] %s1250_s16 }
  0xc9   : > { %p3710_p8 = scmp.ne.s32.totalorder %s3708_s2, %s3709_s19  ;;  %s3714_s25 = scalar_lea.hbm %s4828_s24, 48 }
  0xca   : > { %p3715_p11 = scmp.lt.s32.totalorder %s3708_s2, %s4828_s24  ;;  %p3716_p0 = scmp.lt.s32.totalorder %s3714_s25, %s3709_s19 }
  0xcb   : > { %p3712_p4 = pnand %p3710_p8, %p4379_p9 }
  0xcc   : > { %p3717_p1 = por %p3716_p0, %p3715_p11 }
  0xcd   : > { %p3713_p10 = pneg %p3712_p4 }
  0xcf   : > { %p3718_p2 = pnand %p3717_p1, %p3713_p10 }
  0xd1   : > { %3721 = shalt.err (!%p3718_p2)
}
  0xd2   : > { %3348 = dma.hbm_to_vmem [thread:$0]  (!%p4369_p6), %s1249_s20, 768, %s1251_s16, [#allocation16], %s4010_s18, %s4010_s18, %s4011_s26  }
  0xd3   : > { %1332 = sbr.rel (%p4359_p5) target bundleno = 2661 (0xa65), region = 180  ;;  %p4853_p13 = scmp.eq.s32.totalorder (!%p4359_p5), %s4295_s11, 0 }
  0xd8   : > { %3894 = dma.done.wait (%p4853_p13), [#allocation7], 768   ;;  %p4854_p9 = pmov %p4853_p13 }
  0xda   : > { %3896 = vsyncadd (%p4854_p9), [#allocation7], 4294966528  ;;  %p4855_p8 = pmov %p4854_p9 }
  0xdc   : > { %3898 = dma.done.wait (%p4855_p8), [#allocation10], 1536   ;;  %p4856_p4 = pmov %p4855_p8 }
  0xde   : > { %3900 = vsyncadd (%p4856_p4), [#allocation10], 4294965760  ;;  %p4857_p10 = pmov %p4856_p4 }
  0xdf   : > { %p4858_p6 = pmov %p4856_p4 }
  0xe0   : > { %3902 = dma.done.wait (%p4857_p10), [#allocation13], 1536  }
  0xe1   : > { %3904 = vsyncadd (%p4858_p6), [#allocation13], 4294965760  ;;  %p4859_p5 = pmov %p4856_p4 }
  0xe2   : > { %p4860_p13 = pmov %p4856_p4 }
  0xe3   : > { %3906 = dma.done.wait (%p4859_p5), [#allocation16], 768  }
  0xe4   : > { %3908 = vsyncadd (%p4860_p13), [#allocation16], 4294966528  ;;  %s4861_s5 = sld [smem:[#allocation30_spill]]  ;;  %p1490_p11 = scmp.lt.s32.totalorder %s3951_s1, 1 }
  0xe5   : > { %s4862_s26 = sld [smem:[#allocation31_spill]]  ;;  %s4472_s3 = sand.u32 1, %s3939_s4  }
  0xe6   : > { %s4475_s28 = scalar_select %p1490_p11, %s3951_s1, 1 }
  0xe7   : > { %s4787_s14 = sand.u32 1, %s3927_s23   ;;  %s4789_s25 = scalar_lea.vmem [#allocation17], %s4472_s3 }
  0xe8   : > { %s3071_s18 = sshll.u32 %s4475_s28, 2  ;;  %s1496_s15 = scalar_lea.vmem %s4033_s9, %s4475_s28 }
  0xe9   : > { %s3072_s20 = sshll.u32 %s4475_s28, 3  ;;  %s1507_s16 = scalar_lea.vmem %s4048_s21, %s4475_s28  ;;  %v4493_v3 = vld [vmem:[%s1496_s15] sm:$0x1] }
  0xea   : > { %s1493_s0 = scalar_lea.vmem %s4861_s5, %s3071_s18  ;;  %s4484_s22 = scalar_lea.vmem %s4038_s13, %s3072_s20 }
  0xeb   : > { %s4487_s8 = scalar_lea.vmem %s4043_s17, %s3072_s20  ;;  %s1510_s2 = scalar_lea.vmem %s4862_s26, %s4475_s28 }
  0xec   : > { %s4497_s19 = sshll.u32 %s4787_s14, 2  ;;  %s1476_s7 = scalar_lea.vmem [#allocation18], %s4472_s3 }
  0xed   : > { %s4788_s24 = scalar_lea.vmem [#allocation20], %s4472_s3  ;;  %s4863_s29 = sld [smem:[#allocation69_spill]] }
  0xf3   : > { %p3074_p0 = scmp.ne.s32.totalorder %s4863_s29, 0 }
  0xf4   : > { %s4864_s29 = sld [smem:[#allocation33_spill]] (!%p3074_p0) }
  0xf5   : > { %1516 = sbr.rel (%p3074_p0) target bundleno = 2512 (0x9d0), region = 208  ;;  %s4869_s26 = sld [smem:[#allocation34_spill]] (!%p3074_p0) }
  0xf6   : > { %s4870_s18 = sld [smem:[#allocation35_spill]] (!%p3074_p0) }
  0xf7   : > { %s4871_s15 = sld [smem:[#allocation37_spill]] (!%p3074_p0) }
  0xf8   : > { %s4873_s20 = sld [smem:[#allocation38_spill]] (!%p3074_p0) }
  0xfa   : > { %v3262_v4 = vld [vmem:[#allocation6 + $0x18] sm:$0xff]  ;;  %v3260_v5 = vld [vmem:[#allocation6 + $0x8] sm:$0xff]  ;;  %v3261_v7 = vld [vmem:[#allocation6 + $0x10] sm:$0xff]  ;;  %vm1555_vm0 = vcmask 261120   ;;  %vm1530_vm1 = vcmask 1040384   ;;  %vm1603_vm2 = vcmask 1043456  }
  0xfb   : > { %v3264_v6 = vld [vmem:[#allocation6 + $0x28] sm:$0xff]  ;;  %v3259_v8 = vld [vmem:[#allocation6] sm:$0xff]  ;;  %1565 = vmatpush.bf16.msra.mxu0 %v3262_v4  ;;  %1593 = vmatpush.bf16.msra.mxu1 %v3260_v5  ;;  %v4504_v10 = vld [vmem:[%s1493_s0] sm:$0xf]  ;;  %vm1531_vm3 = vsmask.f32 256 }
  0xfc   : > { %v3263_v9 = vld [vmem:[#allocation6 + $0x20] sm:$0xff]  ;;  %1633 = vmatpush.bf16.msra.mxu2 %v3264_v6  ;;  %v1520_v11 = vunpack.c.l.b16 %v4504_v10  ;;  %vm1604_vm4 = vsmask.f32 3328  ;;  %vm4510_vm5 = vmand %vm1530_vm1, %vm1531_vm3  ;;  %v3521_v27 = vld [vmem:[%s4864_s29] ss:$0 sm:$0xff]  ;;  %v4016_v35 = vmov 32.0  }
  0xfd   : > { %vm4515_vm6 = vmand %vm1603_vm2, %vm1604_vm4  ;;  %3541 = vrcp.f32 %v4016_v35  ;;  %v3268_v47 = vld [vmem:[#allocation9 + $0x18] sm:$0xff]  ;;  %v3267_v48 = vld [vmem:[#allocation9 + $0x10] sm:$0xff]  ;;  %s4872_s0 = sld [smem:[#allocation42_spill]]  ;;  %vm2196_vm2 = vcmask 121856  }
  0xfe   : > { %v1521_v12 = vpack.c.b16 %v1520_v11, %v1520_v11  ;;  %1729 = vmatpush.bf16.msra.mxu3 %v3268_v47  ;;  %v3266_v51 = vld [vmem:[#allocation9 + $0x8] sm:$0xff]  ;;  %v3265_v54 = vld [vmem:[#allocation9] sm:$0xff]  ;;  %v3272_v61 = vld [vmem:[#allocation11 + $0x8] sm:$0xff]  ;;  %s4874_s29 = sld [smem:[#allocation39_spill]] }
  0xff   : > { %1566 = vmatpush.bf16.msra.mxu0 %v3261_v7  ;;  %1594 = vmatpush.bf16.msra.mxu1 %v3259_v8  ;;  %v3270_v52 = vld [vmem:[#allocation9 + $0x28] sm:$0xff]  ;;  %v3269_v55 = vld [vmem:[#allocation9 + $0x20] sm:$0xff]  ;;  %v3276_v62 = vld [vmem:[#allocation11 + $0x28] sm:$0xff] }
 0x100   : > { %1634 = vmatpush.bf16.msra.mxu2 %v3263_v9  ;;  %v1523_v13 = vshrl.u32 %v1521_v12, 16  ;;  %v1526_v14 = vshll.u32 %v1521_v12, 16  ;;  %v3274_v56 = vld [vmem:[#allocation11 + $0x18] sm:$0xff]  ;;  %v3273_v57 = vld [vmem:[#allocation11 + $0x10] sm:$0xff]  ;;  %v3271_v0 = vld [vmem:[#allocation11] sm:$0xff] }
 0x101   : > { %v3275_v1 = vld [vmem:[#allocation11 + $0x20] sm:$0xff]  ;;  %v3522_v5 = vld [vmem:[%s4869_s26] ss:$0 sm:$0xff]  ;;  %s4875_s26 = sld [smem:[#allocation40_spill]] }
 0x102   : > { %3083 = vmatmul.msk.bf16.vlgmr.msra.gmra.mxu0 %vm1555_vm0, %v4504_v10  ;;  %v1525_v15 = vrot.slane %v1523_v13, 7  ;;  %v1600_v17 = vrot.slane %v1526_v14, 1  ;;  %1730 = vmatpush.bf16.msra.mxu3 %v3267_v48  ;;  %v3523_v8 = vld [vmem:[%s4870_s18] ss:$0 sm:$0xff]  ;;  %s4876_s18 = sld [smem:[#allocation43_spill]] }
 0x103   : > { %v3542_v36 = vpop.eup %3541  ;;  %1757 = vmatpush.bf16.msrb.mxu0 %v3266_v51  ;;  %1794 = vmatpush.bf16.msrb.mxu1 %v3270_v52 }
 0x104   : > { %v1528_v19 = vor.u32 %v1526_v14, %v1525_v15  ;;  %v1601_v20 = vor.u32 %v1600_v17, %v1523_v13  ;;  %v1651_v37 = vmul.f32 32.0, %v3542_v36  ;;  %vm1655_vm7 = vweird.f32 %v3542_v36 }
 0x106   : > { %v4521_v21 = vsel %vm4510_vm5, 0, %v1528_v19  ;;  %v4525_v22 = vsel %vm4515_vm6, %v1601_v20, 0  ;;  %v1652_v38 = vsub.f32 1.0, %v1651_v37  ;;  %1899 = vmatpush.bf16.msrb.mxu3 %v3274_v56 }
 0x107   : > { %3092 = vmatmul.msk.bf16.vlgmr.msra.gmra.mxu1 %vm1555_vm0, %v4521_v21  ;;  %3101 = vmatmul.msk.bf16.vlgmr.msra.gmra.mxu2 %vm1555_vm0, %v4525_v22 }
 0x108   : > { %v1653_v39 = vmul.f32 %v3542_v36, %v1652_v38  ;;  %1758 = vmatpush.bf16.msrb.mxu0 %v3265_v54  ;;  %1795 = vmatpush.bf16.msrb.mxu1 %v3269_v55 }
 0x10a   : > { %v1654_v40 = vadd.f32 %v3542_v36, %v1653_v39  ;;  %1900 = vmatpush.bf16.msrb.mxu3 %v3273_v57 }
 0x10c   : > { %v4533_v41 = vsel %vm1655_vm7, %v3542_v36, %v1654_v40  ;;  %1924 = vmatpush.bf16.msra.mxu0 %v3272_v61  ;;  %1954 = vmatpush.bf16.msra.mxu1 %v3276_v62  ;;  %vm2224_vm7 = vcmask 130048  }
 0x110   : > { %1925 = vmatpush.bf16.msra.mxu0 %v3271_v0  ;;  %1955 = vmatpush.bf16.msra.mxu1 %v3275_v1  ;;  %v3282_v0 = vld [vmem:[#allocation12 + $0x28] sm:$0xff] }
 0x17f   : > { %v1568_v23 = vpop.f32.mrf.mxu0 }
 0x184   : > { %v1596_v24 = vpop.f32.mrf.mxu1 }
 0x185   : > { %v1597_v25 = vadd.f32 %v1596_v24, %v1568_v23 }
 0x187   : > { %v1570_v26 = vpop.f32.mrf.mxu0 }
 0x18a   : > { %v1636_v28 = vpop.f32.mrf.mxu2 }
 0x18b   : > { %v1640_v29 = vadd.f32 %v1636_v28, %v1597_v25 }
 0x18c   : > { %v1598_v30 = vpop.f32.mrf.mxu1 }
 0x18d   : > { %v1645_v31 = vadd.f32 %v3521_v27, %v1640_v29 }
 0x18f   : > { %v1646_v32 = vmax.f32 %v1645_v31, 0.0  ;;  %v3524_v31 = vld [vmem:[%s4871_s15] ss:$0 sm:$0xff]  ;;  %s4878_s15 = sld [smem:[#allocation58_spill]] }
 0x191   : > { %v1647_v33 = vsel %vm1555_vm0, %v1646_v32, 0.0 }
 0x192   : > { %v1638_v34 = vpop.f32.mrf.mxu2  ;;  %1648 = vadd.xlane.f32.xlu0 %v1647_v33 }
 0x205   : > { %v1649_v42 = vpop.xlane.xlu0 %1648 }
 0x206   : > { %v1657_v43 = vmul.f32 %v4533_v41, %v1649_v42 }
 0x208   : > { %v1658_v44 = vsub.f32 %v1646_v32, %v1657_v43 }
 0x20a   : > { %v1659_v45 = vmul.f32 %v1658_v44, %v1658_v44 }
 0x20c   : > { %v1660_v46 = vsel %vm1555_vm0, %v1659_v45, 0.0 }
 0x20d   : > { %1661 = vadd.xlane.f32.xlu0 %v1660_v46 }
 0x280   : > { %v1662_v49 = vpop.xlane.xlu0 %1661 }
 0x281   : > { %v1663_v50 = vmul.f32 %v1662_v49, %v4533_v41 }
 0x283   : > { %v1664_v53 = vadd.f32 1e-05, %v1663_v50 }
 0x285   : > { %3543 = vrsqrt.f32 %v1664_v53  ;;  %vm1671_vm9 = vweird.f32 %v1664_v53 }
 0x28b   : > { %v3544_v58 = vpop.eup %3543 }
 0x28c   : > { %v1666_v59 = vmul.f32 %v3544_v58, %v1664_v53  ;;  %vm1672_vm8 = vweird.f32 %v3544_v58 }
 0x28d   : > { %vm1673_vm10 = vmor %vm1671_vm9, %vm1672_vm8 }
 0x28e   : > { %v1667_v60 = vmul.f32 %v3544_v58, %v1666_v59 }
 0x290   : > { %v1668_v63 = vmul.f32 0.5, %v1667_v60 }
 0x292   : > { %v1669_v2 = vsub.f32 1.5, %v1668_v63  ;;  %v3278_v63 = vld [vmem:[#allocation12 + $0x8] sm:$0xff] }
 0x294   : > { %v1670_v4 = vmul.f32 %v3544_v58, %v1669_v2 }
 0x296   : > { %v1674_v6 = vsel %vm1673_vm10, %v3544_v58, %v1670_v4 }
 0x297   : > { %v1675_v7 = vmul.f32 %v1674_v6, %v1658_v44 }
 0x299   : > { %v1680_v9 = vmul.f32 %v3522_v5, %v1675_v7 }
 0x29b   : > { %v1685_v11 = vadd.f32 %v3523_v8, %v1680_v9 }
 0x29d   : > { %v1686_v12 = vpack.c.bf16 %v1685_v11, %v1685_v11 }
 0x29f   : > { %v1688_v13 = vunpack.c.l.b16 %v1686_v12  ;;  %3110 = vmatmul.msk.bf16.vlgmr.msra.gmra.mxu3 %vm1555_vm0, %v1686_v12  ;;  %v3527_v12 = vld [vmem:[%s4873_s20] ss:$0 sm:$0xff]  ;;  %s4880_s20 = sld [smem:[#allocation59_spill]] }
 0x2a0   : > { %2071 = vmatpush.bf16.msra.mxu3 %v3278_v63 }
 0x2a1   : > { %v1689_v14 = vpack.c.b16 %v1688_v13, %v1688_v13  ;;  %v3277_v13 = vld [vmem:[#allocation12] sm:$0xff] }
 0x2a3   : > { %v1691_v15 = vshrl.u32 %v1689_v14, 16  ;;  %v1694_v17 = vshll.u32 %v1689_v14, 16  ;;  %v3281_v14 = vld [vmem:[#allocation12 + $0x20] sm:$0xff] }
 0x2a4   : > { %2072 = vmatpush.bf16.msra.mxu3 %v3277_v13 }
 0x2a5   : > { %v1693_v19 = vrot.slane %v1691_v15, 7  ;;  %v1764_v20 = vrot.slane %v1694_v17, 1  ;;  %v3283_v13 = vld [vmem:[%s4880_s20] sm:$0xff]  ;;  %s4888_s20 = sld [smem:[#allocation60_spill]] }
 0x2a7   : > { %v1696_v23 = vor.u32 %v1694_v17, %v1693_v19  ;;  %v1765_v24 = vor.u32 %v1764_v20, %v1691_v15  ;;  %v3528_v19 = vld [vmem:[%s4874_s29] ss:$0 sm:$0xff]  ;;  %s4881_s29 = sld [smem:[#allocation46_spill]] }
 0x2a8   : > { %v2184_v20 = vld [vmem:[%s4484_s22] sm:$0xff]  ;;  %s4877_s22 = sld [smem:[#allocation44_spill]] }
 0x2a9   : > { %v1698_v25 = vsel %vm4510_vm5, 0, %v1696_v23  ;;  %v1767_v26 = vsel %vm4515_vm6, %v1765_v24, 0  ;;  %v4017_v23 = vmov 0  }
 0x2aa   : > { %3119 = vmatmul.msk.bf16.vlgmr.msrb.gmra.mxu0 %vm1555_vm0, %v1698_v25  ;;  %3128 = vmatmul.msk.bf16.vlgmr.msrb.gmra.mxu1 %vm1555_vm0, %v1767_v26 }
 0x2ab   : > { %2108 = vmatpush.bf16.msrb.mxu0 %v3282_v0  ;;  %3518 = vset.pattern.permute.xlu0 %v4017_v23 }
 0x2ac   : > { %3519 = vset.pattern.permute.xlu2 %v4017_v23  ;;  %2188 = vperm.xlu0 %3518, %v2184_v20  }
 0x2ad   : > { %3520 = vset.pattern.permute.xlu1 %v4017_v23 }
 0x2af   : > { %3138 = vmatmul.msk.bf16.vlgmr.msrb.gmra.mxu3 %vm1555_vm0, %v4504_v10  ;;  %2109 = vmatpush.bf16.msrb.mxu0 %v3281_v14  ;;  %v2210_v14 = vlaneseq }
 0x2ba   : > { %3147 = vmatmul.msk.bf16.vlgmr.msra.gmra.mxu0 %vm1555_vm0, %v4521_v21  ;;  %3156 = vmatmul.msk.bf16.vlgmr.msra.gmra.mxu1 %vm1555_vm0, %v4525_v22  ;;  %v3525_v22 = vld [vmem:[%s4872_s0] ss:$0 sm:$0xff]  ;;  %s4879_s0 = sld [smem:[#allocation45_spill]] }
 0x322   : > { %v1732_v27 = vpop.f32.mrf.mxu3 }
 0x327   : > { %v1760_v28 = vpop.f32.mrf.mxu0  ;;  %v1797_v29 = vpop.f32.mrf.mxu1 }
 0x328   : > { %v1761_v30 = vadd.f32 %v1760_v28, %v1732_v27 }
 0x32a   : > { %v1801_v32 = vadd.f32 %v1797_v29, %v1761_v30  ;;  %v1734_v33 = vpop.f32.mrf.mxu3  ;;  %v3280_v29 = vld [vmem:[#allocation12 + $0x18] sm:$0xff] }
 0x32b   : > { %v3279_v33 = vld [vmem:[#allocation12 + $0x10] sm:$0xff] }
 0x32c   : > { %v1806_v34 = vadd.f32 %v3524_v31, %v1801_v32 }
 0x32e   : > { %v1807_v35 = vmax.f32 %v1806_v34, 0.0 }
 0x32f   : > { %v1762_v36 = vpop.f32.mrf.mxu0  ;;  %v1799_v37 = vpop.f32.mrf.mxu1 }
 0x330   : > { %v1808_v38 = vsel %vm1555_vm0, %v1807_v35, 0.0  ;;  %v1840_v36 = vld [vmem:[%s4875_s26] sm:$0x1]  ;;  %s4882_s26 = sld [smem:[#allocation47_spill]] }
 0x331   : > { %1809 = vadd.xlane.f32.xlu1 %v1808_v38  ;;  %v3526_v37 = vld [vmem:[%s4876_s18] ss:$0 sm:$0xff]  ;;  %s4883_s18 = sld [smem:[#allocation48_spill]] }
 0x332   : > { %v1902_v39 = vpop.f32.mrf.mxu3 }
 0x337   : > { %v1927_v21 = vpop.f32.mrf.mxu0  ;;  %v1957_v40 = vpop.f32.mrf.mxu1 }
 0x338   : > { %v1928_v42 = vadd.f32 %v1927_v21, %v1902_v39  ;;  %v3529_v21 = vld [vmem:[%s4877_s22] ss:$0 sm:$0xff]  ;;  %s4884_s22 = sld [smem:[#allocation50_spill]] }
 0x33a   : > { %v1961_v43 = vadd.f32 %v1957_v40, %v1928_v42  ;;  %v1904_v44 = vpop.f32.mrf.mxu3 }
 0x33c   : > { %v1966_v45 = vadd.f32 %v3525_v22, %v1961_v43 }
 0x33e   : > { %v1967_v46 = vmax.f32 %v1966_v45, 0.0 }
 0x33f   : > { %v1929_v47 = vpop.f32.mrf.mxu0  ;;  %v1959_v48 = vpop.f32.mrf.mxu1 }
 0x340   : > { %v1968_v49 = vsel %vm1555_vm0, %v1967_v46, 0.0 }
 0x341   : > { %1969 = vadd.xlane.f32.xlu1 %v1968_v49 }
 0x3a4   : > { %v1810_v50 = vpop.xlane.xlu1 %1809 }
 0x3a5   : > { %v1811_v51 = vmul.f32 %v1810_v50, %v4533_v41 }
 0x3a7   : > { %v1812_v52 = vsub.f32 %v1807_v35, %v1811_v51 }
 0x3a9   : > { %v1813_v53 = vmul.f32 %v1812_v52, %v1812_v52 }
 0x3ab   : > { %v1814_v54 = vsel %vm1555_vm0, %v1813_v53, 0.0  ;;  %v3530_v53 = vld [vmem:[%s4878_s15] ss:$0 sm:$0xff]  ;;  %s4886_s15 = sld [smem:[#allocation52_spill]] }
 0x3ac   : > { %1815 = vadd.xlane.f32.xlu2 %v1814_v54  ;;  %v2189_v54 = vpop.permute.xlu0 %2188 }
 0x3ad   : > { %vm2194_vm3 = vcmp.gt.f32.partialorder %v2189_v54, %v3530_v53 }
 0x3b4   : > { %v1970_v55 = vpop.xlane.xlu1 %1969 }
 0x3b5   : > { %v1971_v56 = vmul.f32 %v1970_v55, %v4533_v41  ;;  %v2195_v55 = vsel %vm2194_vm3, 1, %v4017_v23 }
 0x3b7   : > { %v1972_v57 = vsub.f32 %v1967_v46, %v1971_v56  ;;  %v2197_v56 = vsel %vm2196_vm2, %v2195_v55, 0 }
 0x3b9   : > { %v1973_v58 = vmul.f32 %v1972_v57, %v1972_v57 }
 0x3bb   : > { %v1974_v59 = vsel %vm1555_vm0, %v1973_v58, 0.0 }
 0x3bc   : > { %1975 = vadd.xlane.f32.xlu2 %v1974_v59  ;;  %v2198_v59 = vand.u32 65535, %v2197_v56 }
 0x41f   : > { %v1816_v60 = vpop.xlane.xlu2 %1815 }
 0x420   : > { %v1817_v61 = vmul.f32 %v1816_v60, %v4533_v41  ;;  %v2200_v60 = vcvt.s32.f32 %v2198_v59 }
 0x422   : > { %v1818_v62 = vadd.f32 1e-05, %v1817_v61  ;;  %2202 = vadd.xlane.f32.xlu2 %v2200_v60  ;;  %v3532_v60 = vld [vmem:[%s4881_s29] ss:$0 sm:$0xff]  ;;  %s4889_s29 = sld [smem:[#allocation61_spill]] }
 0x424   : > { %3545 = vrsqrt.f32 %v1818_v62  ;;  %vm1825_vm12 = vweird.f32 %v1818_v62 }
 0x42a   : > { %v3546_v1 = vpop.eup %3545 }
 0x42b   : > { %v1820_v2 = vmul.f32 %v3546_v1, %v1818_v62  ;;  %vm1826_vm11 = vweird.f32 %v3546_v1 }
 0x42c   : > { %vm1827_vm13 = vmor %vm1825_vm12, %vm1826_vm11  ;;  %vm1868_vm12 = vcmp.gt.s32.totalorder %v4493_v3, 0 }
 0x42d   : > { %v1821_v4 = vmul.f32 %v3546_v1, %v1820_v2 }
 0x42f   : > { %v1822_v5 = vmul.f32 0.5, %v1821_v4  ;;  %v1976_v6 = vpop.xlane.xlu2 %1975  ;;  %v3531_v4 = vld [vmem:[%s4879_s0] ss:$0 sm:$0xff]  ;;  %s4887_s0 = sld [smem:[#allocation54_spill]] }
 0x430   : > { %v1977_v7 = vmul.f32 %v1976_v6, %v4533_v41 }
 0x431   : > { %v1823_v8 = vsub.f32 1.5, %v1822_v5 }
 0x432   : > { %v1978_v9 = vadd.f32 1e-05, %v1977_v7 }
 0x433   : > { %v1824_v11 = vmul.f32 %v3546_v1, %v1823_v8 }
 0x434   : > { %3547 = vrsqrt.f32 %v1978_v9  ;;  %vm1985_vm15 = vweird.f32 %v1978_v9 }
 0x435   : > { %v1828_v15 = vsel %vm1827_vm13, %v3546_v1, %v1824_v11  ;;  %vm1870_vm13 = vcmask 57344  }
 0x436   : > { %v1829_v17 = vmul.f32 %v1828_v15, %v1812_v52 }
 0x438   : > { %v1834_v24 = vmul.f32 %v3527_v12, %v1829_v17 }
 0x43a   : > { %v3548_v25 = vpop.eup %3547  ;;  %v1839_v26 = vadd.f32 %v3528_v19, %v1834_v24  ;;  %v4589_v24 = vand.u32 127, %v2210_v14 }
 0x43b   : > { %v1980_v27 = vmul.f32 %v3548_v25, %v1978_v9  ;;  %vm1986_vm14 = vweird.f32 %v3548_v25 }
 0x43c   : > { %v1841_v28 = vpack.c.bf16 %v1839_v26, %v1839_v26  ;;  %vm1987_vm1 = vmor %vm1985_vm15, %vm1986_vm14 }
 0x43d   : > { %v1981_v30 = vmul.f32 %v3548_v25, %v1980_v27  ;;  %v4018_v27 = vmov 0.0  }
 0x43e   : > { %v1853_v31 = vsel %vm1555_vm0, %v1841_v28, 0 }
 0x43f   : > { %v1982_v32 = vmul.f32 0.5, %v1981_v30  ;;  %1862 = vmatpush.bf16.xpose.msrb.mxu2 %v1853_v31 }
 0x441   : > { %v1983_v34 = vsub.f32 1.5, %v1982_v32 }
 0x443   : > { %v1984_v35 = vmul.f32 %v3548_v25, %v1983_v34 }
 0x445   : > { %v1988_v38 = vsel %vm1987_vm1, %v3548_v25, %v1984_v35  ;;  %v3287_v35 = vld [vmem:[#allocation14 + $0x18] sm:$0xff] }
 0x446   : > { %v1989_v39 = vmul.f32 %v1988_v38, %v1972_v57  ;;  %3129 = vmatmul.msk.bf16.vlgmr.msrb.gmra.mxu2 %vm1555_vm0, %v1840_v36  ;;  %v2199_v57 = vshrl.u32 %v2197_v56, 16  ;;  %2285 = vmatpush.bf16.msrb.mxu3 %v3287_v35  ;;  %v1518_v36 = vunpack.c.l.bf16 %v4504_v10 }
 0x447   : > { %2043 = vmatpush.bf16.msra.mxu2 %v3280_v29 }
 0x448   : > { %v1994_v40 = vmul.f32 %v3526_v37, %v1989_v39  ;;  %v2201_v58 = vcvt.s32.f32 %v2199_v57  ;;  %v3286_v39 = vld [vmem:[#allocation14 + $0x10] sm:$0xff] }
 0x44a   : > { %v1999_v42 = vadd.f32 %v3529_v21, %v1994_v40  ;;  %2204 = vadd.xlane.f32.xlu1 %v2201_v58  ;;  %2286 = vmatpush.bf16.msrb.mxu3 %v3286_v39  ;;  %v2156_v39 = vld [vmem:[#allocation4] sm:$0x1] }
 0x44b   : > { %2044 = vmatpush.bf16.msra.mxu2 %v3279_v33 }
 0x44c   : > { %v2000_v22 = vpack.c.bf16 %v1999_v42, %v1999_v42 }
 0x44e   : > { %v2002_v43 = vunpack.c.l.b16 %v2000_v22 }
 0x44f   : > { %2235 = vmatpush.bf16.msrb.mxu2 %v3283_v13 }
 0x450   : > { %v2003_v44 = vpack.c.b16 %v2002_v43, %v2002_v43 }
 0x452   : > { %v2005_v45 = vshrl.u32 %v2003_v44, 16  ;;  %v2008_v46 = vshll.u32 %v2003_v44, 16 }
 0x454   : > { %v2007_v47 = vrot.slane %v2005_v45, 7  ;;  %v2078_v48 = vrot.slane %v2008_v46, 1 }
 0x456   : > { %3165 = vmatmul.msk.bf16.vlgmr.msra.gmra.mxu2 %vm1555_vm0, %v2000_v22  ;;  %v2010_v49 = vor.u32 %v2008_v46, %v2007_v47  ;;  %v2079_v50 = vor.u32 %v2078_v48, %v2005_v45  ;;  %v3285_v22 = vld [vmem:[#allocation14 + $0x8] sm:$0xff]  ;;  %v3284_v47 = vld [vmem:[#allocation14] sm:$0xff] }
 0x457   : > { %2313 = vmatpush.bf16.msra.mxu0 %v3285_v22  ;;  %v3295_v22 = vld [vmem:[#allocation15 + $0x28] sm:$0xff] }
 0x458   : > { %v2012_v51 = vsel %vm4510_vm5, 0, %v2010_v49  ;;  %v2081_v52 = vsel %vm4515_vm6, %v2079_v50, 0 }
 0x459   : > { %3174 = vmatmul.msk.bf16.vlgmr.msra.gmra.mxu3 %vm1555_vm0, %v2012_v51  ;;  %3183 = vmatmul.msk.bf16.vlgmr.msrb.gmra.mxu0 %vm1555_vm0, %v2081_v52 }
 0x45b   : > { %2314 = vmatpush.bf16.msra.mxu0 %v3284_v47 }
 0x45f   : > { %2504 = vmatpush.bf16.msrb.mxu0 %v3295_v22 }
 0x495   : > { %v2203_v19 = vpop.xlane.xlu2 %2202 }
 0x496   : > { %v2206_v25 = vcvt.f32.s32 %v2203_v19 }
 0x4bd   : > { %v2205_v15 = vpop.xlane.xlu1 %2204 }
 0x4be   : > { %v2207_v17 = vcvt.f32.s32 %v2205_v15 }
 0x4c0   : > { %v2208_v20 = vshll.u32 %v2207_v17, 16 }
 0x4c2   : > { %v2209_v26 = vadd.s32 %v2208_v20, %v2206_v25  ;;  %v3534_v20 = vld [vmem:[%s4884_s22] ss:$0 sm:$0xff]  ;;  %s4892_s22 = sld [smem:[#allocation57_spill]] }
 0x4c4   : > { %vm2212_vm4 = vcmp.eq.s32.totalorder %v4589_v24, %v2209_v26 }
 0x4c5   : > { %v3185_v28 = vsel %vm2212_vm4, 1.0, %v4018_v27  ;;  %vm2635_vm4 = vcmask 257024  }
 0x4c6   : > { %v2215_v29 = vpack.c.bf16 %v3185_v28, %v3185_v28 }
 0x4c8   : > { %3190 = vmatmul.msk.bf16.vlgmr.msrb.gmra.mxu2 %vm2224_vm7, %v2215_v29 }
 0x4c9   : > { %v4584_v61 = vpop.f32.mrf.mxu2 }
 0x4d1   : > { %v1866_v62 = vpop.f32.mrf.mxu2 }
 0x4d6   : > { %v2111_v63 = vpop.f32.mrf.mxu0 }
 0x4d9   : > { %v2046_v0 = vpop.f32.mrf.mxu2 }
 0x4dc   : > { %v2074_v1 = vpop.f32.mrf.mxu3 }
 0x4dd   : > { %v2075_v2 = vadd.f32 %v2074_v1, %v2046_v0  ;;  %v3533_v0 = vld [vmem:[%s4882_s26] ss:$0 sm:$0xff]  ;;  %s4890_s26 = sld [smem:[#allocation55_spill]] }
 0x4de   : > { %v2113_v5 = vpop.f32.mrf.mxu0 }
 0x4df   : > { %v2115_v6 = vadd.f32 %v2111_v63, %v2075_v2  ;;  %v3289_v5 = vld [vmem:[#allocation14 + $0x28] sm:$0xff] }
 0x4e1   : > { %v2048_v7 = vpop.f32.mrf.mxu2  ;;  %v2120_v8 = vadd.f32 %v3531_v4, %v2115_v6 }
 0x4e2   : > { %v3288_v7 = vld [vmem:[#allocation14 + $0x20] sm:$0xff] }
 0x4e3   : > { %v2121_v9 = vmax.f32 %v2120_v8, 0.0  ;;  %v2154_v8 = vld [vmem:[%s4883_s18] sm:$0x1]  ;;  %s4891_s18 = sld [smem:[#allocation56_spill]] }
 0x4e4   : > { %v2076_v11 = vpop.f32.mrf.mxu3 }
 0x4e5   : > { %v2122_v12 = vsel %vm1555_vm0, %v2121_v9, 0.0 }
 0x4e6   : > { %2123 = vadd.xlane.f32.xlu1 %v2122_v12 }
 0x54b   : > { %v2237_v37 = vpop.f32.mrf.mxu2 }
 0x54c   : > { %v4597_v38 = vadd.f32 %v2237_v37, %v1518_v36  ;;  %v2580_v37 = vld [vmem:[%s4487_s8] sm:$0xff]  ;;  %s4885_s8 = sld [smem:[#allocation51_spill]] }
 0x54e   : > { %v2242_v21 = vpack.c.bf16 %v4597_v38, %v4597_v38 }
 0x550   : > { %v2244_v40 = vunpack.c.l.b16 %v2242_v21  ;;  %3199 = vmatmul.msk.bf16.vlgmr.msrb.gmra.mxu3 %vm1555_vm0, %v2242_v21  ;;  %v3293_v21 = vld [vmem:[#allocation15 + $0x18] sm:$0xff] }
 0x551   : > { %2439 = vmatpush.bf16.msra.mxu2 %v3293_v21 }
 0x552   : > { %v2245_v42 = vpack.c.b16 %v2244_v40, %v2244_v40  ;;  %v3292_v40 = vld [vmem:[#allocation15 + $0x10] sm:$0xff] }
 0x553   : > { %v2239_v43 = vpop.f32.mrf.mxu2 }
 0x554   : > { %v2247_v44 = vshrl.u32 %v2245_v42, 16  ;;  %v2250_v45 = vshll.u32 %v2245_v42, 16  ;;  %v3291_v42 = vld [vmem:[#allocation15 + $0x8] sm:$0xff] }
 0x555   : > { %2440 = vmatpush.bf16.msra.mxu2 %v3292_v40  ;;  %2467 = vmatpush.bf16.msra.mxu3 %v3291_v42 }
 0x556   : > { %v2249_v46 = vrot.slane %v2247_v44, 7  ;;  %v2320_v49 = vrot.slane %v2250_v45, 1 }
 0x558   : > { %v2252_v10 = vor.u32 %v2250_v45, %v2249_v46  ;;  %v2321_v50 = vor.u32 %v2320_v49, %v2247_v44  ;;  %v3290_v45 = vld [vmem:[#allocation15] sm:$0xff] }
 0x559   : > { %v2124_v30 = vpop.xlane.xlu1 %2123  ;;  %v3294_v46 = vld [vmem:[#allocation15 + $0x20] sm:$0xff]  ;;  %2468 = vmatpush.bf16.msra.mxu3 %v3290_v45 }
 0x55a   : > { %v2125_v31 = vmul.f32 %v2124_v30, %v4533_v41  ;;  %v2254_v48 = vsel %vm4510_vm5, 0, %v2252_v10  ;;  %2505 = vmatpush.bf16.msrb.mxu0 %v3294_v46 }
 0x55b   : > { %3208 = vmatmul.msk.bf16.vlgmr.msra.gmra.mxu0 %vm1555_vm0, %v2254_v48 }
 0x55c   : > { %v2126_v32 = vsub.f32 %v2121_v9, %v2125_v31  ;;  %v2323_v9 = vsel %vm4515_vm6, %v2321_v50, 0 }
 0x55e   : > { %v2127_v33 = vmul.f32 %v2126_v32, %v2126_v32 }
 0x560   : > { %v2128_v34 = vsel %vm1555_vm0, %v2127_v33, 0.0 }
 0x561   : > { %2129 = vadd.xlane.f32.xlu2 %v2128_v34 }
 0x5d3   : > { %v2288_v11 = vpop.f32.mrf.mxu3 }
 0x5d4   : > { %v2130_v51 = vpop.xlane.xlu2 %2129 }
 0x5d5   : > { %v2131_v52 = vmul.f32 %v2130_v51, %v4533_v41 }
 0x5d7   : > { %v2132_v53 = vadd.f32 1e-05, %v2131_v52 }
 0x5d8   : > { %v2316_v12 = vpop.f32.mrf.mxu0 }
 0x5d9   : > { %3549 = vrsqrt.f32 %v2132_v53  ;;  %vm2139_vm9 = vweird.f32 %v2132_v53  ;;  %v2317_v13 = vadd.f32 %v2316_v12, %v2288_v11 }
 0x5db   : > { %v2290_v14 = vpop.f32.mrf.mxu3 }
 0x5dc   : > { %v2552_v14 = vld [vmem:[#allocation5] sm:$0x1] }
 0x5df   : > { %v3550_v54 = vpop.eup %3549 }
 0x5e0   : > { %v2134_v55 = vmul.f32 %v3550_v54, %v2132_v53  ;;  %vm2140_vm8 = vweird.f32 %v3550_v54  ;;  %v2318_v15 = vpop.f32.mrf.mxu0 }
 0x5e1   : > { %vm2141_vm10 = vmor %vm2139_vm9, %vm2140_vm8 }
 0x5e2   : > { %v2135_v56 = vmul.f32 %v3550_v54, %v2134_v55 }
 0x5e4   : > { %v2136_v57 = vmul.f32 0.5, %v2135_v56 }
 0x5e6   : > { %v2137_v58 = vsub.f32 1.5, %v2136_v57  ;;  %v3535_v57 = vld [vmem:[%s4885_s8] ss:$0 sm:$0xff] }
 0x5e8   : > { %v2138_v59 = vmul.f32 %v3550_v54, %v2137_v58 }
 0x5ea   : > { %v2142_v62 = vsel %vm2141_vm10, %v3550_v54, %v2138_v59 }
 0x5eb   : > { %v2143_v63 = vmul.f32 %v2142_v62, %v2126_v32  ;;  %v3537_v62 = vld [vmem:[%s4886_s15] ss:$0 sm:$0xff] }
 0x5ed   : > { %v2148_v1 = vmul.f32 %v3532_v60, %v2143_v63 }
 0x5ef   : > { %v2153_v2 = vadd.f32 %v3533_v0, %v2148_v1 }
 0x5f1   : > { %v2155_v4 = vpack.c.bf16 %v2153_v2, %v2153_v2 }
 0x5f3   : > { %v2167_v6 = vsel %vm1555_vm0, %v2155_v4, 0 }
 0x5f4   : > { %2176 = vmatpush.bf16.xpose.msrb.mxu1 %v2167_v6 }
 0x5fb   : > { %3184 = vmatmul.msk.bf16.vlgmr.msrb.gmra.mxu1 %vm1555_vm0, %v2154_v8 }
 0x5fc   : > { %2350 = vmatpush.bf16.msra.mxu1 %v3289_v5 }
 0x600   : > { %2351 = vmatpush.bf16.msra.mxu1 %v3288_v7 }
 0x60b   : > { %3217 = vmatmul.msk.bf16.vlgmr.msra.gmra.mxu1 %vm1555_vm0, %v2323_v9 }
 0x678   : > { %v2178_v17 = vpop.f32.mrf.mxu1 }
 0x680   : > { %v2180_v19 = vpop.f32.mrf.mxu1 }
 0x688   : > { %v2353_v25 = vpop.f32.mrf.mxu1 }
 0x689   : > { %v2357_v26 = vadd.f32 %v2353_v25, %v2317_v13 }
 0x68b   : > { %v2362_v28 = vadd.f32 %v3534_v20, %v2357_v26  ;;  %v3538_v26 = vld [vmem:[%s4887_s0] ss:$0 sm:$0xff] }
 0x68d   : > { %v2363_v29 = vmax.f32 %v2362_v28, 0.0 }
 0x68f   : > { %v2364_v30 = vsel %vm1555_vm0, %v2363_v29, 0.0 }
 0x690   : > { %v2355_v31 = vpop.f32.mrf.mxu1  ;;  %2365 = vadd.xlane.f32.xlu1 %v2364_v30 }
 0x703   : > { %v2366_v32 = vpop.xlane.xlu1 %2365 }
 0x704   : > { %v2367_v33 = vmul.f32 %v2366_v32, %v4533_v41  ;;  %v3536_v32 = vld [vmem:[%s4888_s20] ss:$0 sm:$0xff] }
 0x706   : > { %v2368_v34 = vsub.f32 %v2363_v29, %v2367_v33 }
 0x708   : > { %v2369_v35 = vmul.f32 %v2368_v34, %v2368_v34 }
 0x70a   : > { %v2370_v36 = vsel %vm1555_vm0, %v2369_v35, 0.0 }
 0x70b   : > { %2371 = vadd.xlane.f32.xlu2 %v2370_v36 }
 0x723   : > { %2584 = vperm.xlu2 %3519, %v2580_v37  }
 0x72b   : > { %2159 = vperm.xlu2 %3519, %v2156_v39  }
 0x733   : > { %2555 = vperm.xlu2 %3519, %v2552_v14  }
 0x77e   : > { %v2372_v43 = vpop.xlane.xlu2 %2371 }
 0x77f   : > { %v2373_v44 = vmul.f32 %v2372_v43, %v4533_v41 }
 0x781   : > { %v2374_v47 = vadd.f32 1e-05, %v2373_v44  ;;  %v1842_v44 = vld [vmem:[#allocation3] sm:$0x1] }
 0x783   : > { %3551 = vrsqrt.f32 %v2374_v47  ;;  %vm2381_vm14 = vweird.f32 %v2374_v47 }
 0x786   : > { %v2585_v10 = vpop.permute.xlu2 %2584 }
 0x789   : > { %v3552_v48 = vpop.eup %3551 }
 0x78a   : > { %v2376_v49 = vmul.f32 %v3552_v48, %v2374_v47  ;;  %vm2382_vm11 = vweird.f32 %v3552_v48 }
 0x78b   : > { %vm2383_vm15 = vmor %vm2381_vm14, %vm2382_vm11 }
 0x78c   : > { %v2377_v50 = vmul.f32 %v3552_v48, %v2376_v49 }
 0x78e   : > { %v2378_v51 = vmul.f32 0.5, %v2377_v50  ;;  %v2160_v52 = vpop.permute.xlu2 %2159 }
 0x78f   : > { %v2162_v53 = vperm.slane %v2160_v52, 0 }
 0x790   : > { %v2379_v54 = vsub.f32 1.5, %v2378_v51 }
 0x791   : > { %v2179_v55 = vadd.f32 %v2178_v17, %v2162_v53 }
 0x792   : > { %v2380_v56 = vmul.f32 %v3552_v48, %v2379_v54 }
 0x793   : > { %v2182_v58 = vsel %vm1868_vm12, 0.0, %v2179_v55 }
 0x794   : > { %v2384_v59 = vsel %vm2383_vm15, %v3552_v48, %v2380_v56  ;;  %2183 = vst.msk [vmem:[%s1476_s7] sm:$0x1] %vm1870_vm13, %v2182_v58 }
 0x795   : > { %v2385_v60 = vmul.f32 %v2384_v59, %v2368_v34 }
 0x796   : > { %v2556_v14 = vpop.permute.xlu2 %2555 }
 0x797   : > { %v2390_v63 = vmul.f32 %v3535_v57, %v2385_v60  ;;  %v3539_v60 = vld [vmem:[%s4890_s26] ss:$0 sm:$0xff] }
 0x799   : > { %v2395_v0 = vadd.f32 %v3537_v62, %v2390_v63 }
 0x79b   : > { %v2396_v1 = vpack.c.bf16 %v2395_v0, %v2395_v0  ;;  %v3540_v0 = vld [vmem:[%s4891_s18] ss:$0 sm:$0xff] }
 0x79d   : > { %3226 = vmatmul.msk.bf16.vlgmr.msra.gmra.mxu2 %vm1555_vm0, %v2396_v1  ;;  %v2398_v2 = vunpack.c.l.b16 %v2396_v1 }
 0x79f   : > { %v2399_v4 = vpack.c.b16 %v2398_v2, %v2398_v2 }
 0x7a1   : > { %v2401_v5 = vshrl.u32 %v2399_v4, 16  ;;  %v2404_v6 = vshll.u32 %v2399_v4, 16 }
 0x7a3   : > { %v2403_v7 = vrot.slane %v2401_v5, 7  ;;  %v2474_v8 = vrot.slane %v2404_v6, 1 }
 0x7a5   : > { %v2406_v9 = vor.u32 %v2404_v6, %v2403_v7  ;;  %v2475_v11 = vor.u32 %v2474_v8, %v2401_v5  ;;  %v2550_v7 = vld [vmem:[%s4892_s22] sm:$0x1] }
 0x7a7   : > { %v2408_v12 = vsel %vm4510_vm5, 0, %v2406_v9  ;;  %v2477_v13 = vsel %vm4515_vm6, %v2475_v11, 0  ;;  %vm2590_vm5 = vcmp.gt.f32.partialorder %v2585_v10, %v3536_v32 }
 0x7a8   : > { %3235 = vmatmul.msk.bf16.vlgmr.msra.gmra.mxu3 %vm1555_vm0, %v2408_v12  ;;  %3244 = vmatmul.msk.bf16.vlgmr.msrb.gmra.mxu0 %vm1555_vm0, %v2477_v13  ;;  %v2591_v33 = vsel %vm2590_vm5, 1, %v4017_v23  ;;  %v3296_v23 = vld [vmem:[%s4889_s29] sm:$0xff] }
 0x7a9   : > { %v2592_v34 = vsel %vm2196_vm2, %v2591_v33, 0  ;;  %2627 = vmatpush.bf16.msrb.mxu2 %v3296_v23 }
 0x7aa   : > { %v2594_v35 = vshrl.u32 %v2592_v34, 16  ;;  %v2593_v22 = vand.u32 65535, %v2592_v34 }
 0x7ac   : > { %v2596_v36 = vcvt.s32.f32 %v2594_v35  ;;  %v2595_v43 = vcvt.s32.f32 %v2593_v22 }
 0x7ae   : > { %2599 = vadd.xlane.f32.xlu0 %v2596_v36 }
 0x820   : > { %v2442_v15 = vpop.f32.mrf.mxu2 }
 0x821   : > { %v2600_v46 = vpop.xlane.xlu0 %2599 }
 0x822   : > { %v2602_v48 = vcvt.f32.s32 %v2600_v46 }
 0x824   : > { %v2603_v49 = vshll.u32 %v2602_v48, 16 }
 0x825   : > { %v2507_v17 = vpop.f32.mrf.mxu0 }
 0x828   : > { %v2444_v19 = vpop.f32.mrf.mxu2 }
 0x82b   : > { %v2470_v20 = vpop.f32.mrf.mxu3 }
 0x82c   : > { %v2471_v25 = vadd.f32 %v2470_v20, %v2442_v15  ;;  %v2558_v15 = vperm.slane %v2556_v14, 0 }
 0x82d   : > { %v2509_v28 = vpop.f32.mrf.mxu0 }
 0x82e   : > { %v2511_v29 = vadd.f32 %v2507_v17, %v2471_v25 }
 0x830   : > { %v2516_v16 = vadd.f32 %v3538_v26, %v2511_v29 }
 0x832   : > { %v2517_v30 = vmax.f32 %v2516_v16, 0.0 }
 0x833   : > { %v2472_v31 = vpop.f32.mrf.mxu3 }
 0x834   : > { %v2518_v18 = vsel %vm1555_vm0, %v2517_v30, 0.0 }
 0x835   : > { %2519 = vadd.xlane.f32.xlu1 %v2518_v18 }
 0x8a8   : > { %v2520_v37 = vpop.xlane.xlu1 %2519 }
 0x8a9   : > { %v2521_v39 = vmul.f32 %v2520_v37, %v4533_v41 }
 0x8ab   : > { %v2522_v21 = vsub.f32 %v2517_v30, %v2521_v39 }
 0x8ad   : > { %v2523_v40 = vmul.f32 %v2522_v21, %v2522_v21 }
 0x8af   : > { %v2524_v42 = vsel %vm1555_vm0, %v2523_v40, 0.0 }
 0x8b0   : > { %2525 = vadd.xlane.f32.xlu1 %v2524_v42 }
 0x8b8   : > { %2597 = vadd.xlane.f32.xlu1 %v2595_v43 }
 0x8d1   : > { %1845 = vperm.xlu1 %3520, %v1842_v44  }
 0x923   : > { %v2526_v45 = vpop.xlane.xlu1 %2525 }
 0x924   : > { %v2527_v47 = vmul.f32 %v2526_v45, %v4533_v41 }
 0x926   : > { %v2528_v10 = vadd.f32 1e-05, %v2527_v47 }
 0x928   : > { %3553 = vrsqrt.f32 %v2528_v10  ;;  %vm2535_vm2 = vweird.f32 %v2528_v10 }
 0x92b   : > { %v2598_v50 = vpop.xlane.xlu1 %2597 }
 0x92c   : > { %v2601_v51 = vcvt.f32.s32 %v2598_v50 }
 0x92e   : > { %v3554_v52 = vpop.eup %3553  ;;  %v2604_v53 = vadd.s32 %v2603_v49, %v2601_v51 }
 0x92f   : > { %v2530_v54 = vmul.f32 %v3554_v52, %v2528_v10  ;;  %vm2536_vm1 = vweird.f32 %v3554_v52 }
 0x930   : > { %vm2605_vm6 = vcmp.eq.s32.totalorder %v4589_v24, %v2604_v53  ;;  %vm2537_vm3 = vmor %vm2535_vm2, %vm2536_vm1 }
 0x931   : > { %v2531_v55 = vmul.f32 %v3554_v52, %v2530_v54  ;;  %v3246_v56 = vsel %vm2605_vm6, 1.0, %v4018_v27 }
 0x932   : > { %v2608_v57 = vpack.c.bf16 %v3246_v56, %v3246_v56 }
 0x933   : > { %v2532_v58 = vmul.f32 0.5, %v2531_v55 }
 0x934   : > { %3251 = vmatmul.msk.bf16.vlgmr.msrb.gmra.mxu2 %vm2224_vm7, %v2608_v57 }
 0x935   : > { %v2533_v41 = vsub.f32 1.5, %v2532_v58 }
 0x937   : > { %v2534_v59 = vmul.f32 %v3554_v52, %v2533_v41 }
 0x939   : > { %v2538_v62 = vsel %vm2537_vm3, %v3554_v52, %v2534_v59 }
 0x93a   : > { %v2539_v63 = vmul.f32 %v2538_v62, %v2522_v21 }
 0x93c   : > { %v2544_v1 = vmul.f32 %v3539_v60, %v2539_v63 }
 0x93e   : > { %v2549_v24 = vadd.f32 %v3540_v0, %v2544_v1 }
 0x940   : > { %v2551_v2 = vpack.c.bf16 %v2549_v24, %v2549_v24 }
 0x942   : > { %v2563_v27 = vsel %vm1555_vm0, %v2551_v2, 0 }
 0x943   : > { %2572 = vmatpush.bf16.xpose.msrb.mxu1 %v2563_v27  ;;  %v1846_v4 = vpop.permute.xlu1 %1845 }
 0x944   : > { %v1848_v5 = vperm.slane %v1846_v4, 0 }
 0x946   : > { %v1865_v6 = vadd.f32 %v4584_v61, %v1848_v5 }
 0x948   : > { %v1869_v8 = vsel %vm1868_vm12, 0.0, %v1865_v6 }
 0x949   : > { %1871 = vst.msk [vmem:[%s4789_s25] sm:$0x1] %vm1870_vm13, %v1869_v8 }
 0x94a   : > { %3245 = vmatmul.msk.bf16.vlgmr.msrb.gmra.mxu1 %vm1555_vm0, %v2550_v7 }
 0x9b7   : > { %v2629_v9 = vpop.f32.mrf.mxu2 }
 0x9b8   : > { %v2633_v11 = vadd.f32 %v2629_v9, %v4597_v38 }
 0x9ba   : > { %v2634_v12 = vpack.c.bf16 %v2633_v11, %v2633_v11 }
 0x9bc   : > { %2636 = vst.msk [vmem:[#allocation2] sm:$0xf] %vm2635_vm4, %v2634_v12 }
 0x9bf   : > { %v2631_v13 = vpop.f32.mrf.mxu2 }
 0x9c7   : > { %v2574_v61 = vpop.f32.mrf.mxu1 }
 0x9c8   : > { %v2575_v17 = vadd.f32 %v2574_v61, %v2558_v15 }
 0x9ca   : > { %v2578_v19 = vsel %vm1868_vm12, 0.0, %v2575_v17 }
 0x9cb   : > { %2579 = vst.msk [vmem:[%s4788_s24] sm:$0x1] %vm1870_vm13, %v2578_v19 }
 0x9cf   : > { %v2576_v20 = vpop.f32.mrf.mxu1 }
 0x9d0 PF: > { %v2652_v25 = vld [vmem:[#allocation2] sm:$0xf]  ;;  %s4893_s8 = sld [smem:[#allocation69_spill]]  ;;  %vm2657_vm0 = vcmask 1043456   ;;  %v2639_v38 = vlaneseq  ;;  %v4019_v31 = vmov 0.0   ;;  %vm2653_vm10 = vcmask 64512  }
 0x9d1   : > { %v2659_v26 = vsel %vm2657_vm0, %v2652_v25, 0  ;;  %s4895_s20 = sld [smem:[#allocation63_spill]]  ;;  %v3555_v29 = vld [vmem:[%s1507_s16] ss:$0 sm:$0xff]  ;;  %s2714_s16 = sshll.u32 %s1476_s7, 4  ;;  %s2715_s16 = int_to_ptr.vmem [resolvable:$true] %s2714_s16 }
 0x9d2   : > { %2668 = vmatpush.bf16.msra.mxu0 %v2659_v26  ;;  %v2640_v28 = vshrl.u32 %v2639_v38, 7  ;;  %v3556_v16 = vld [vmem:[%s1510_s2] ss:$0 sm:$0xff]  ;;  %s4897_s26 = sld [smem:[#allocation62_spill]] }
 0x9d6   : > { %s3252_s0 = sshll.u32 %s4893_s8, 3 }
 0x9d7   : > { %s4896_s29 = smov %s4895_s20  ;;  %v2642_v3 = vstv %s3252_s0  ;;  %s2681_s0 = sand.u32 1, %s4295_s11  }
 0x9d8   : > { %s4898_s18 = smov %s4897_s26  ;;  %v2643_v30 = vadd.s32 %v2642_v3, %v2640_v28  ;;  %s2712_s14 = scalar_lea.hbm %s4895_s20, %s3951_s1 }
 0x9d9   : > { %s2716_s28 = sshll.u32 %s2712_s14, 4  ;;  %s2699_s2 = scalar_lea.hbm %s4897_s26, %s3951_s1  ;;  %s2717_s28 = int_to_ptr.hbm [resolvable:$true] %s2716_s28 }
 0x9da   : > { %vm2645_vm7 = vcmp.ge.s32.totalorder %v2643_v30, %v3555_v29  ;;  %vm2647_vm8 = vcmp.lt.s32.totalorder %v2643_v30, %v3556_v16  ;;  %s4678_s15 = scalar_lea.sflag [#allocation19], %s2681_s0  ;;  %s3751_s27 = sshra.s32 %s2717_s28, 4  ;;  %s3752_s27 = int_to_ptr.hbm [resolvable:$true] %s3751_s27 }
 0x9db   : > { %vm2648_vm9 = vmand %vm2645_vm7, %vm2647_vm8  ;;  %s3753_s24 = scalar_lea.hbm %s3752_s27, 1  ;;  %s3757_s25 = scalar_lea.hbm %s4896_s29, 2 }
 0x9dc   : > { %v3253_v18 = vsel %vm2648_vm9, 1.0, %v4019_v31  ;;  %p3754_p1 = scmp.ne.s32.totalorder %s3752_s27, %s3753_s24  ;;  %p3758_p8 = scmp.lt.s32.totalorder %s3752_s27, %s4896_s29 }
 0x9dd   : > { %v2651_v32 = vpack.c.bf16 %v3253_v18, %v3253_v18  ;;  %p3759_p4 = scmp.lt.s32.totalorder %s3757_s25, %s3753_s24 }
 0x9de   : > { %p3755_p2 = pnand %p3754_p1, %p4309_p3 }
 0x9df   : > { %3254 = vmatmul.msk.bf16.vlgmr.msra.gmra.mxu0 %vm2653_vm10, %v2651_v32  ;;  %p3760_p10 = por %p3759_p4, %p3758_p8 }
 0x9e0   : > { %p3756_p9 = pneg %p3755_p2 }
 0x9e2   : > { %p3761_p6 = pnand %p3760_p10, %p3756_p9 }
 0x9e4   : > { %3764 = shalt.err (!%p3761_p6)
}
 0x9e5   : > { %s4900_s7 = sld [smem:[#allocation64_spill]]  ;;  %s4901_s11 = scalar_lea.vmem [#allocation17], %s4472_s3 }
 0x9e6   : > { %3323 = dma.vmem_to_hbm [thread:$0]  (%p4309_p3), %s2715_s16, 16, %s2717_s28, %s4678_s15  }
 0x9e7   : > { %s2701_s14 = sshll.u32 %s4901_s11, 4  ;;  %s2703_s20 = sshll.u32 %s2699_s2, 4  ;;  %s2702_s14 = int_to_ptr.vmem [resolvable:$true] %s2701_s14  ;;  %s2704_s20 = int_to_ptr.hbm [resolvable:$true] %s2703_s20 }
 0x9e8   : > { %s2678_s27 = scalar_lea.sflag [#allocation8], %s4472_s3  ;;  %s3779_s25 = sshra.s32 %s2704_s20, 4  ;;  %s3780_s25 = int_to_ptr.hbm [resolvable:$true] %s3779_s25 }
 0x9e9   : > { %s3781_s26 = scalar_lea.hbm %s3780_s25, 1  ;;  %s3785_s0 = scalar_lea.hbm %s4898_s18, 2 }
 0x9ea   : > { %p3782_p5 = scmp.ne.s32.totalorder %s3780_s25, %s3781_s26  ;;  %p3786_p0 = scmp.lt.s32.totalorder %s3780_s25, %s4898_s18 }
 0x9eb   : > { %s2725_s24 = scalar_lea.hbm %s4900_s7, %s3951_s1  ;;  %p3787_p1 = scmp.lt.s32.totalorder %s3785_s0, %s3781_s26 }
 0x9ec   : > { %p3783_p13 = pnand %p3782_p5, %p4309_p3 }
 0x9ed   : > { %p3788_p2 = por %p3787_p1, %p3786_p0 }
 0x9ee   : > { %p3784_p11 = pneg %p3783_p13 }
 0x9f0   : > { %p3789_p9 = pnand %p3788_p2, %p3784_p11 }
 0x9f2   : > { %3792 = shalt.err (!%p3789_p9)
}
 0x9f3   : > { %3322 = dma.vmem_to_hbm [thread:$0]  (%p4309_p3), %s2702_s14, 16, %s2704_s20, %s2678_s27  }
 0x9f4   : > { %s4902_s16 = scalar_lea.vmem [#allocation20], %s4472_s3  ;;  %s2729_s2 = sshll.u32 %s2725_s24, 4  ;;  %s2730_s2 = int_to_ptr.hbm [resolvable:$true] %s2729_s2 }
 0x9f5   : > { %s2727_s28 = sshll.u32 %s4902_s16, 4  ;;  %s3807_s11 = sshra.s32 %s2730_s2, 4  ;;  %s2728_s28 = int_to_ptr.vmem [resolvable:$true] %s2727_s28  ;;  %s3808_s11 = int_to_ptr.hbm [resolvable:$true] %s3807_s11 }
 0x9f6   : > { %s3809_s5 = scalar_lea.hbm %s3808_s11, 1  ;;  %s3813_s25 = scalar_lea.hbm %s4900_s7, 2 }
 0x9f7   : > { %p3810_p8 = scmp.ne.s32.totalorder %s3808_s11, %s3809_s5  ;;  %p3814_p6 = scmp.lt.s32.totalorder %s3808_s11, %s4900_s7 }
 0x9f8   : > { %p3815_p5 = scmp.lt.s32.totalorder %s3813_s25, %s3809_s5 }
 0x9f9   : > { %p3811_p4 = pnand %p3810_p8, %p4309_p3 }
 0x9fa   : > { %p3816_p13 = por %p3815_p5, %p3814_p6 }
 0x9fb   : > { %p3812_p10 = pneg %p3811_p4 }
 0x9fd   : > { %p3817_p11 = pnand %p3816_p13, %p3812_p10 }
 0x9ff   : > { %3820 = shalt.err (!%p3817_p11)
}
 0xa00   : > { %s4903_s3 = sld [smem:[#allocation65_spill]]  ;;  %s3297_s14 = smul.u32 3, %s3951_s1  ;;  %vm2675_vm11 = vcmask 257024  }
 0xa01   : > { %3324 = dma.vmem_to_hbm [thread:$0]  (%p4309_p3), %s2728_s28, 16, %s2730_s2, %s4678_s15  }
 0xa02   : > { %s2739_s20 = sadd.s32 %s4893_s8, %s3297_s14  ;;  %s4904_s26 = scalar_lea.vmem [#allocation21], %s4497_s19 }
 0xa03   : > { %s3256_s24 = sshll.u32 %s2739_s20, 2  ;;  %s2743_s5 = sshll.u32 %s4904_s26, 4  ;;  %s2744_s5 = int_to_ptr.vmem [resolvable:$true] %s2743_s5 }
 0xa04   : > { %s4905_s22 = smov %s4904_s26  ;;  %s4906_s16 = sand.u32 1, %s3927_s23  }
 0xa05   : > { %s2690_s11 = scalar_lea.sflag [#allocation22], %s4906_s16 }
 0xa06   : > { %s2741_s27 = scalar_lea.hbm %s4903_s3, %s3256_s24  ;;  %s3841_s8 = scalar_lea.hbm %s4903_s3, 24 }
 0xa07   : > { %s2745_s0 = sshll.u32 %s2741_s27, 4  ;;  %s2746_s0 = int_to_ptr.hbm [resolvable:$true] %s2745_s0 }
 0xa08   : > { %s3835_s15 = sshra.s32 %s2746_s0, 4  ;;  %s3836_s15 = int_to_ptr.hbm [resolvable:$true] %s3835_s15 }
 0xa09   : > { %s3837_s1 = scalar_lea.hbm %s3836_s15, 4  ;;  %p3842_p2 = scmp.lt.s32.totalorder %s3836_s15, %s4903_s3 }
 0xa0a   : > { %p3838_p3 = scmp.ne.s32.totalorder %s3836_s15, %s3837_s1  ;;  %p3843_p9 = scmp.lt.s32.totalorder %s3841_s8, %s3837_s1 }
 0xa0c   : > { %p3839_p0 = pnand %p3838_p3, %p4340_p12  ;;  %p3844_p8 = por %p3843_p9, %p3842_p2 }
 0xa0e   : > { %p3840_p1 = pneg %p3839_p0 }
 0xa10   : > { %p3845_p4 = pnand %p3844_p8, %p3840_p1 }
 0xa5c   : > { %v2670_v33 = vpop.f32.mrf.mxu0 }
 0xa5d   : > { %v2674_v34 = vpack.c.bf16 %v2670_v33, %v2670_v33 }
 0xa5f   : > { %2676 = vst.msk [vmem:[%s4905_s22] sm:$0xf] %vm2675_vm11, %v2674_v34 }
 0xa60   : > { %3848 = shalt.err (!%p3845_p4)
}
 0xa61   : > { %3325 = dma.vmem_to_hbm [thread:$0]  (%p4340_p12), %s2744_s5, 64, %s2746_s0, %s2690_s11  }
 0xa64   : > { %v2672_v35 = vpop.f32.mrf.mxu0 }
 0xa65 PF: > { %s4907_s19 = sld [smem:[#allocation67_spill]]  ;;  %p3374_p10 = scmp.ge.s32.totalorder %s3963_s10, 2 }
 0xa67   : > { %p3350_p6 = pnand %p3374_p10, %p4328_p7 }
 0xa69   : > { %p3351_p5 = pneg %p3350_p6 }
 0xa6b   : > { %s2757_s2 = sand.u32 1, %s4907_s19  }
 0xa6c   : > { %s2758_s25 = scalar_lea.sflag [#allocation8], %s2757_s2 }
 0xa6d   : > { %3910 = dma.done.wait (%p3351_p5), %s2758_s25, 16  }
 0xa6e   : > { %3912 = vsyncadd (%p3351_p5), %s2758_s25, 4294967280  ;;  %s4909_s14 = sadd.s32 4294967294, %s3963_s10  }
 0xa6f   : > { %s2766_s20 = sand.u32 1, %s4909_s14  }
 0xa70   : > { %s2767_s24 = scalar_lea.sflag [#allocation19], %s2766_s20 }
 0xa71   : > { %3914 = dma.done.wait (%p3351_p5), %s2767_s24, 32  }
 0xa72   : > { %3916 = vsyncadd (%p3351_p5), %s2767_s24, 4294967264  ;;  %s4910_s6 = sld [smem:[#allocation78_spill]]  ;;  %s2784_s27 = sand.u32 1, %s3923_s12  }
 0xa73   : > { %s2785_s26 = scalar_lea.sflag [#allocation22], %s2784_s27 }
 0xa78   : > { %p4911_p12 = scmp.ne.s32.totalorder %s4910_s6, 0 }
 0xa7a   : > { %p3359_p13 = pnand %p3374_p10, %p4911_p12 }
 0xa7c   : > { %p3360_p11 = pneg %p3359_p13 }
 0xa7e   : > { %3918 = dma.done.wait (%p3360_p11), %s2785_s26, 64  }
 0xa7f   : > { %3920 = vsyncadd (%p3360_p11), %s2785_s26, 4294967232  ;;  %s117_s10 = sadd.s32 1, %s3963_s10   ;;  %s4912_s5 = sld [smem:[#allocation66_spill]] }
 0xa80   : > { %p114_p7 = scmp.ge.s32.totalorder %s117_s10, 8   ;;  %s4913_s26 = sld [smem:[#allocation77_spill]] }
 0xa81   : > { %s4914_s22 = sld [smem:[#allocation68_spill]]  ;;  %s4920_s12 = smov %s3927_s23 }
 0xa82   : > { %s4915_s16 = sld [smem:[#allocation76_spill]]  ;;  %s4922_s0 = smov %s3939_s4 }
 0xa83   : > { %s4916_s20 = sld [smem:[#allocation70_spill]] }
 0xa84   : > { %s4917_s1 = sld [smem:[#allocation71_spill]]  ;;  %116 = sbr.rel (!%p114_p7) target bundleno = 101 (0x65), region = 363 }
 0xa85   : > { %s4918_s2 = sld [smem:[#allocation72_spill]]  ;;  %s4921_s23 = smov %s4912_s5 }
 0xa86   : > { %s4919_s15 = sld [smem:[#allocation74_spill]] }
 0xa87   : > { %s4923_s4 = smov %s4914_s22 }
 0xa88   : > { %s4924_s22 = smov %s4915_s16 }
 0xa89   :  { %2791 = vsyncpa [#allocation7], 1 }
 0xa8a   :  { %2793 = vsyncpa [#allocation7 + $0x1], 1 }
 0xa8b   :  { %2794 = vsyncpa [#allocation10], 1 }
 0xa8c   :  { %2795 = vsyncpa [#allocation13], 1 }
 0xa8d   :  { %2796 = vsyncpa [#allocation16], 1 }
 0xa8e   :  { %2797 = vsyncpa [#allocation8], 1 }
 0xa8f   :  { %2799 = vsyncpa [#allocation8 + $0x1], 1 }
 0xa90   :  { %2800 = vsyncpa [#allocation19], 1 }
 0xa91   :  { %2802 = vsyncpa [#allocation19 + $0x1], 1 }
 0xa92   :  { %2803 = vsyncpa [#allocation22], 1 }
 0xa93   :  { %2805 = vsyncpa [#allocation22 + $0x1], 1 }

</bundles_post_ra>
